<compile_context>
chip_gen: v7x
topology: tpu7x:2x2x1
jax: 0.10.0
libtpu: 0.0.40
codegen_flags: <defaults>
</compile_context>

<pallas_src>
import math
import functools

import jax
import jax.numpy as jnp
from jax.experimental import pallas as pl
from jax.experimental.pallas import tpu as pltpu


_VMEM_LIMIT = 48 * 1024 * 1024   # explicit scoped-VMEM cap with headroom
_MAX_TM = 512                    # max rows per M tile
_EPS = 1e-5


# ----------------------------------------------------------------------------
# Pallas kernels
# ----------------------------------------------------------------------------

def _fused_conv_bn_kernel(*refs, m_valid, relu, has_residual, eps):
    """Single-pass conv (im2col matmul) + train-mode BN (+ residual) (+ ReLU).

    Used when the whole M dimension fits in one tile.  Grid = (nn, nk) with the
    K reduction innermost; the output (Mp, tn) tile and the f32 accumulator are
    resident across K.  Padded rows/cols of the patch matrix are exactly zero
    so they do not perturb the batch statistics (divide by the true M).
    """
    if has_residual:
        x_ref, w_ref, g_ref, b_ref, r_ref, o_ref, acc_ref = refs
    else:
        x_ref, w_ref, g_ref, b_ref, o_ref, acc_ref = refs
        r_ref = None

    k = pl.program_id(1)

    @pl.when(k == 0)
    def _():
        acc_ref[...] = jnp.zeros_like(acc_ref)

    acc_ref[...] += jnp.dot(x_ref[...], w_ref[...],
                            preferred_element_type=jnp.float32)

    @pl.when(k == pl.num_programs(1) - 1)
    def _():
        acc = acc_ref[...]
        inv_n = 1.0 / m_valid
        mean = jnp.sum(acc, axis=0, keepdims=True) * inv_n
        var = jnp.sum(acc * acc, axis=0, keepdims=True) * inv_n - mean * mean
        var = jnp.maximum(var, 0.0)                       # guard cancellation
        yn = (acc - mean) * jax.lax.rsqrt(var + eps)
        yn = yn * g_ref[...] + b_ref[...]
        if has_residual:
            yn = yn + r_ref[...].astype(jnp.float32)
        if relu:
            yn = jnp.maximum(yn, 0.0)
        o_ref[...] = yn.astype(o_ref.dtype)


def _matmul_stats_kernel(x_ref, w_ref, y_ref, stats_ref, acc_ref):
    """Tiled matmul (bf16 in, f32 acc) producing raw bf16 output tiles plus
    per-(M-tile, N-tile) partial column sums / sums-of-squares for BN."""
    k = pl.program_id(2)

    @pl.when(k == 0)
    def _():
        acc_ref[...] = jnp.zeros_like(acc_ref)

    acc_ref[...] += jnp.dot(x_ref[...], w_ref[...],
                            preferred_element_type=jnp.float32)

    @pl.when(k == pl.num_programs(2) - 1)
    def _():
        acc = acc_ref[...]
        y_ref[...] = acc.astype(y_ref.dtype)
        s1 = jnp.sum(acc, axis=0, keepdims=True)          # (1, tn)
        s2 = jnp.sum(acc * acc, axis=0, keepdims=True)    # (1, tn)
        row = jax.lax.broadcasted_iota(jnp.int32, (8, s1.shape[1]), 0)
        stats_ref[...] = jnp.where(row == 0, s1, jnp.where(row == 1, s2, 0.0))


def _bn_apply_kernel(*refs, relu, has_residual):
    """Apply precomputed BN scale/shift (+ fused residual add) (+ ReLU)."""
    if has_residual:
        y_ref, scale_ref, shift_ref, r_ref, o_ref = refs
    else:
        y_ref, scale_ref, shift_ref, o_ref = refs
        r_ref = None
    out = y_ref[...].astype(jnp.float32) * scale_ref[...] + shift_ref[...]
    if has_residual:
        out = out + r_ref[...].astype(jnp.float32)
    if relu:
        out = jnp.maximum(out, 0.0)
    o_ref[...] = out.astype(o_ref.dtype)


def _maxpool_kernel(x_ref, o_ref):
    # x_ref: (taps, tm, C) -> max over taps
    o_ref[...] = jnp.max(x_ref[...], axis=0)


# ----------------------------------------------------------------------------
# Glue helpers
# ----------------------------------------------------------------------------

def _round_up(v, m):
    return (v + m - 1) // m * m


def _choose_m(M):
    """Pick (padded M, M-tile).  16-row granularity for bf16 sublane packing."""
    Mp = _round_up(max(M, 16), 16)
    if Mp <= _MAX_TM:
        return Mp, Mp
    return _round_up(Mp, _MAX_TM), _MAX_TM


def _choose_div(size, candidates=(512, 256, 128)):
    for c in candidates:
        if size % c == 0:
            return c
    return candidates[-1]


def _im2col(x, kh, kw, stride, dilation, padding, pad_value=0.0):
    """x: (N,H,W,C) -> patches (N,Ho,Wo,kh*kw*C) using pure slicing."""
    N, H, W, C = x.shape
    xp = jnp.pad(x, ((0, 0), (padding, padding), (padding, padding), (0, 0)),
                 constant_values=pad_value)
    Hp, Wp = H + 2 * padding, W + 2 * padding
    Ho = (Hp - dilation * (kh - 1) - 1) // stride + 1
    Wo = (Wp - dilation * (kw - 1) - 1) // stride + 1
    cols = []
    for i in range(kh):
        for j in range(kw):
            sl = xp[:, i * dilation: i * dilation + (Ho - 1) * stride + 1: stride,
                       j * dilation: j * dilation + (Wo - 1) * stride + 1: stride, :]
            cols.append(sl)
    return jnp.concatenate(cols, axis=-1), Ho, Wo


# ----------------------------------------------------------------------------
# Conv + BN (+residual +ReLU) wrapper
# ----------------------------------------------------------------------------

def _conv_bn_2d(p2, w2, gamma, beta, relu, res2, eps=_EPS):
    """p2: (M, K) patches, w2: (K, Cout).  Returns (M, Cout) bf16."""
    M, K = p2.shape
    Cout = w2.shape[1]

    Mp, tm = _choose_m(M)
    Kp = _round_up(K, 128)
    tk = _choose_div(Kp)
    Np = _round_up(Cout, 128)
    tn = _choose_div(Np)
    nm, nn, nk = Mp // tm, Np // tn, Kp // tk

    xp = jnp.pad(p2.astype(jnp.bfloat16), ((0, Mp - M), (0, Kp - K)))
    wp = jnp.pad(w2.astype(jnp.bfloat16), ((0, Kp - K), (0, Np - Cout)))
    gp = jnp.pad(gamma.astype(jnp.float32), (0, Np - Cout)).reshape(1, Np)
    bp = jnp.pad(beta.astype(jnp.float32), (0, Np - Cout)).reshape(1, Np)
    rp = None
    if res2 is not None:
        rp = jnp.pad(res2.astype(jnp.bfloat16), ((0, Mp - M), (0, Np - Cout)))

    if nm == 1:
        # --- fully fused single-pass: matmul + BN (+residual) (+ReLU) -------
        in_specs = [
            pl.BlockSpec((Mp, tk), lambda n, k: (0, k)),
            pl.BlockSpec((tk, tn), lambda n, k: (k, n)),
            pl.BlockSpec((1, tn), lambda n, k: (0, n)),
            pl.BlockSpec((1, tn), lambda n, k: (0, n)),
        ]
        args = [xp, wp, gp, bp]
        if rp is not None:
            in_specs.append(pl.BlockSpec((Mp, tn), lambda n, k: (0, n)))
            args.append(rp)
        out = pl.pallas_call(
            functools.partial(_fused_conv_bn_kernel, m_valid=float(M),
                              relu=relu, has_residual=rp is not None, eps=eps),
            out_shape=jax.ShapeDtypeStruct((Mp, Np), jnp.bfloat16),
            grid_spec=pltpu.PrefetchScalarGridSpec(
                num_scalar_prefetch=0,
                grid=(nn, nk),
                in_specs=in_specs,
                out_specs=pl.BlockSpec((Mp, tn), lambda n, k: (0, n)),
                scratch_shapes=[pltpu.VMEM((Mp, tn), jnp.float32)],
            ),
            compiler_params=pltpu.CompilerParams(
                dimension_semantics=("parallel", "arbitrary"),
                vmem_limit_bytes=_VMEM_LIMIT),
        )(*args)
        return out[:M, :Cout]

    # --- two-pass: tiled matmul + partial stats, then normalize -------------
    y_raw, stats = pl.pallas_call(
        _matmul_stats_kernel,
        out_shape=(jax.ShapeDtypeStruct((Mp, Np), jnp.bfloat16),
                   jax.ShapeDtypeStruct((nm * 8, Np), jnp.float32)),
        grid_spec=pltpu.PrefetchScalarGridSpec(
            num_scalar_prefetch=0,
            grid=(nm, nn, nk),
            in_specs=[
                pl.BlockSpec((tm, tk), lambda m, n, k: (m, k)),
                pl.BlockSpec((tk, tn), lambda m, n, k: (k, n)),
            ],
            out_specs=(
                pl.BlockSpec((tm, tn), lambda m, n, k: (m, n)),
                pl.BlockSpec((8, tn), lambda m, n, k: (m, n)),
            ),
            scratch_shapes=[pltpu.VMEM((tm, tn), jnp.float32)],
        ),
        compiler_params=pltpu.CompilerParams(
            dimension_semantics=("parallel", "parallel", "arbitrary"),
            vmem_limit_bytes=_VMEM_LIMIT),
    )(xp, wp)

    # Tiny cross-tile reduction of BN statistics (glue, (nm, Np) elements).
    stats = stats.reshape(nm, 8, Np)
    col_sum = jnp.sum(stats[:, 0, :], axis=0)
    col_sq = jnp.sum(stats[:, 1, :], axis=0)
    inv_n = 1.0 / M
    mean = col_sum * inv_n
    var = jnp.maximum(col_sq * inv_n - mean * mean, 0.0)
    scale = gp[0] * jax.lax.rsqrt(var + eps)
    shift = bp[0] - mean * scale
    scale = scale.reshape(1, Np)
    shift = shift.reshape(1, Np)

    in_specs = [
        pl.BlockSpec((tm, tn), lambda m, n: (m, n)),
        pl.BlockSpec((1, tn), lambda m, n: (0, n)),
        pl.BlockSpec((1, tn), lambda m, n: (0, n)),
    ]
    args = [y_raw, scale, shift]
    if rp is not None:
        in_specs.append(pl.BlockSpec((tm, tn), lambda m, n: (m, n)))
        args.append(rp)
    out = pl.pallas_call(
        functools.partial(_bn_apply_kernel, relu=relu,
                          has_residual=rp is not None),
        out_shape=jax.ShapeDtypeStruct((Mp, Np), jnp.bfloat16),
        grid_spec=pltpu.PrefetchScalarGridSpec(
            num_scalar_prefetch=0,
            grid=(nm, nn),
            in_specs=in_specs,
            out_specs=pl.BlockSpec((tm, tn), lambda m, n: (m, n)),
        ),
        compiler_params=pltpu.CompilerParams(
            dimension_semantics=("parallel", "parallel"),
            vmem_limit_bytes=_VMEM_LIMIT),
    )(*args)
    return out[:M, :Cout]


def conv_bn(x, w, gamma, beta, stride, dilation, padding, relu, residual=None):
    """x: (N,H,W,Cin), w: (kh,kw,Cin,Cout) -> (N,Ho,Wo,Cout) bf16.
    If `residual` is given, computes relu(bn(conv(x)) + residual)."""
    kh, kw, cin, cout = w.shape
    patches, Ho, Wo = _im2col(x, kh, kw, stride, dilation, padding, 0.0)
    N = x.shape[0]
    M = N * Ho * Wo
    p2 = patches.reshape(M, kh * kw * cin)
    w2 = w.reshape(kh * kw * cin, cout)
    res2 = None if residual is None else residual.reshape(M, cout)
    y = _conv_bn_2d(p2, w2, gamma, beta, relu, res2)
    return y.reshape(N, Ho, Wo, cout)


def maxpool_3x3_s2_p1(x):
    """PyTorch MaxPool2d(kernel_size=3, stride=2, padding=1) on NHWC."""
    N, H, W, C = x.shape
    patches, Ho, Wo = _im2col(x, 3, 3, 2, 1, 1, pad_value=-jnp.inf)
    M = N * Ho * Wo
    p = patches.reshape(M, 9, C).transpose(1, 0, 2)            # (9, M, C)
    Mp, tm = _choose_m(M)
    Cp = _round_up(C, 128)
    pp = jnp.pad(p.astype(jnp.bfloat16), ((0, 0), (0, Mp - M), (0, Cp - C)))

    out = pl.pallas_call(
        _maxpool_kernel,
        out_shape=jax.ShapeDtypeStruct((Mp, Cp), jnp.bfloat16),
        grid_spec=pltpu.PrefetchScalarGridSpec(
            num_scalar_prefetch=0,
            grid=(Mp // tm,),
            in_specs=[pl.BlockSpec((9, tm, Cp), lambda m: (0, m, 0))],
            out_specs=pl.BlockSpec((tm, Cp), lambda m: (m, 0)),
        ),
        compiler_params=pltpu.CompilerParams(
            dimension_semantics=("parallel",),
            vmem_limit_bytes=_VMEM_LIMIT),
    )(pp)
    return out[:M, :C].reshape(N, Ho, Wo, C)


# ----------------------------------------------------------------------------
# Parameter construction (mirrors ResNet.__init__ / _init_weight)
# ----------------------------------------------------------------------------

EXPANSION = 4  # Bottleneck


class _KeyGen:
    def __init__(self, key):
        self._key = key

    def __call__(self):
        self._key, k = jax.random.split(self._key)
        return k


def _conv_w(key, kh, kw, cin, cout):
    # m.weight.data.normal_(0, sqrt(2 / (kh*kw*out_channels)))
    std = math.sqrt(2.0 / (kh * kw * cout))
    return std * jax.random.normal(key, (kh, kw, cin, cout), dtype=jnp.float32)


def _bn(c):
    return jnp.ones((c,), jnp.float32), jnp.zeros((c,), jnp.float32)


def _make_block(kg, inplanes, planes, stride, dilation, with_ds):
    bp = {"stride": stride, "dilation": dilation}
    bp["conv1_w"] = _conv_w(kg(), 1, 1, inplanes, planes)
    bp["bn1_g"], bp["bn1_b"] = _bn(planes)
    bp["conv2_w"] = _conv_w(kg(), 3, 3, planes, planes)
    bp["bn2_g"], bp["bn2_b"] = _bn(planes)
    bp["conv3_w"] = _conv_w(kg(), 1, 1, planes, planes * EXPANSION)
    bp["bn3_g"], bp["bn3_b"] = _bn(planes * EXPANSION)
    if with_ds:
        bp["ds_w"] = _conv_w(kg(), 1, 1, inplanes, planes * EXPANSION)
        bp["ds_g"], bp["ds_b"] = _bn(planes * EXPANSION)
    return bp


def build_resnet_params(key, layers=(1, 1, 1), output_stride=16, in_c=3):
    if output_stride == 32:
        strides, dilations = [1, 2, 2, 2], [1, 1, 1, 1]
    elif output_stride == 16:
        strides, dilations = [1, 2, 2, 1], [1, 1, 1, 2]
    elif output_stride == 8:
        strides, dilations = [1, 2, 1, 1], [1, 1, 2, 4]
    elif output_stride == 4:
        strides, dilations = [1, 1, 1, 1], [1, 2, 4, 8]
    else:
        raise NotImplementedError
    mg_blocks = [1, 2, 4]

    kg = _KeyGen(key)
    params = {}
    inplanes = 64

    params["conv1_w"] = _conv_w(kg(), 7, 7, in_c, 64)
    params["bn1_g"], params["bn1_b"] = _bn(64)

    def make_layer(planes, n_blocks, stride, dilation):
        nonlocal inplanes
        blocks = []
        for b in range(n_blocks):
            s = stride if b == 0 else 1
            with_ds = (b == 0) and (stride != 1 or inplanes != planes * EXPANSION)
            blocks.append(_make_block(kg, inplanes, planes, s, dilation, with_ds))
            inplanes = planes * EXPANSION
        return blocks

    def make_mg_unit(planes, stride, dilation):
        nonlocal inplanes
        blocks = []
        for i, mg in enumerate(mg_blocks):
            s = stride if i == 0 else 1
            with_ds = (i == 0) and (stride != 1 or inplanes != planes * EXPANSION)
            blocks.append(_make_block(kg, inplanes, planes, s, mg * dilation, with_ds))
            inplanes = planes * EXPANSION
        return blocks

    params["layer1"] = make_layer(64, layers[0], strides[0], dilations[0])
    params["layer2"] = make_layer(128, layers[1], strides[1], dilations[1])
    params["layer3"] = make_layer(256, layers[2], strides[2], dilations[2])
    params["layer4"] = make_mg_unit(512, strides[3], dilations[3])
    return params


# ----------------------------------------------------------------------------
# Forward pass (mirrors ResNet.forward with Bottleneck blocks)
# ----------------------------------------------------------------------------

def _bottleneck_forward(x, bp):
    s, d = bp["stride"], bp["dilation"]
    out = conv_bn(x, bp["conv1_w"], bp["bn1_g"], bp["bn1_b"],
                  stride=1, dilation=1, padding=0, relu=True)
    out = conv_bn(out, bp["conv2_w"], bp["bn2_g"], bp["bn2_b"],
                  stride=s, dilation=d, padding=d, relu=True)
    if "ds_w" in bp:
        residual = conv_bn(x, bp["ds_w"], bp["ds_g"], bp["ds_b"],
                           stride=s, dilation=1, padding=0, relu=False)
    else:
        residual = x
    # conv3 + BN + residual add + ReLU fused into a single epilogue.
    return conv_bn(out, bp["conv3_w"], bp["bn3_g"], bp["bn3_b"],
                   stride=1, dilation=1, padding=0, relu=True,
                   residual=residual)


def _run_layer(x, blocks):
    for bp in blocks:
        x = _bottleneck_forward(x, bp)
    return x


def resnet_forward(x_nchw, params):
    x = jnp.transpose(x_nchw.astype(jnp.float32), (0, 2, 3, 1))  # NCHW -> NHWC
    x = conv_bn(x, params["conv1_w"], params["bn1_g"], params["bn1_b"],
                stride=2, dilation=1, padding=3, relu=True)
    x = maxpool_3x3_s2_p1(x)
    x = _run_layer(x, params["layer1"])
    low2 = x
    x = _run_layer(x, params["layer2"])
    low3 = x
    x = _run_layer(x, params["layer3"])
    low4 = x
    x = _run_layer(x, params["layer4"])
    to_nchw = lambda t: jnp.transpose(t, (0, 3, 1, 2)).astype(jnp.float32)
    return to_nchw(x), to_nchw(low2), to_nchw(low3), to_nchw(low4)


# ----------------------------------------------------------------------------

if __name__ == "__main__":
    key = jax.random.PRNGKey(0)
    kx, kp, ka, kb = jax.random.split(key, 4)

    # Small deterministic input consistent with the module: NCHW, in_c=3.
    x = jax.random.normal(kx, (2, 3, 32, 32), dtype=jnp.float32)
    params = build_resnet_params(kp, layers=(1, 1, 1), output_stride=16, in_c=3)

    outs = resnet_forward(x, params)
    outs = jax.block_until_ready(outs)

    x4, low2, low3, low4 = outs
    assert x4.shape == (2, 2048, 2, 2), x4.shape
    assert low2.shape == (2, 256, 8, 8), low2.shape
    assert low3.shape == (2, 512, 4, 4), low3.shape
    assert low4.shape == (2, 1024, 2, 2), low4.shape
    for o in outs:
        assert bool(jnp.all(jnp.isfinite(o)))

    # Also exercise the multi-M-tile (two-pass) conv+BN path once and check it
    # against a plain-JAX reference (loose tol: bf16 MXU inputs + bf16 store).
    a = jax.random.normal(ka, (544, 192), dtype=jnp.float32)   # M > _MAX_TM
    b = jax.random.normal(kb, (192, 96), dtype=jnp.float32)
    g = jnp.ones((96,), jnp.float32)
    bb = jnp.zeros((96,), jnp.float32)
    y = _conv_bn_2d(a, b, g, bb, relu=True, res2=None)
    y = jax.block_until_ready(y)
    assert y.shape == (544, 96), y.shape
    yr = jnp.dot(a.astype(jnp.bfloat16).astype(jnp.float32),
                 b.astype(jnp.bfloat16).astype(jnp.float32))
    ref = jnp.maximum((yr - yr.mean(0)) * jax.lax.rsqrt(yr.var(0) + _EPS), 0.0)
    err = float(jnp.max(jnp.abs(y.astype(jnp.float32) - ref)))
    assert err < 0.2, err

    # TODO(synk): pretrained weight loading (_load_pretrained_model / model_zoo)
    # has no in-kernel equivalent; weights are initialized per _init_weight.
    print("KERNEL_OK")
</pallas_src>

<mosaic_0001>
module attributes {stable_mosaic.version = 11 : i64} {
  func.func @_fused_conv_bn_kernel(%arg0: i32, %arg1: i32, %arg2: memref<512x256xbf16, #tpu.memory_space<vmem>>, %arg3: memref<256x128xbf16, #tpu.memory_space<vmem>>, %arg4: memref<1x128xf32, #tpu.memory_space<vmem>>, %arg5: memref<1x128xf32, #tpu.memory_space<vmem>>, %arg6: memref<512x128xbf16, #tpu.memory_space<vmem>>, %arg7: memref<512x128xf32, #tpu.memory_space<vmem>>) attributes {dimension_semantics = [#tpu.dimension_semantics<parallel>, #tpu.dimension_semantics<arbitrary>], iteration_bounds = array<i64: 1, 1>, scalar_prefetch = 0 : i64, scratch_operands = 1 : i64, tpu.core_type = #tpu.core_type<tc>, window_params = [{transform_indices = @transform_0, window_bounds = array<i64: 512, 256>}, {transform_indices = @transform_1, window_bounds = array<i64: 256, 128>}, {transform_indices = @transform_2, window_bounds = array<i64: 1, 128>}, {transform_indices = @transform_3, window_bounds = array<i64: 1, 128>}, {transform_indices = @transform_4, window_bounds = array<i64: 512, 128>}]} {
    %c0_i32 = arith.constant 0 : i32
    %0 = arith.cmpi eq, %arg1, %c0_i32 : i32
    %1 = arith.extui %0 : i1 to i32
    %c0_i32_0 = arith.constant 0 : i32
    %2 = arith.cmpi ne, %1, %c0_i32_0 : i32
    scf.if %2 {
      %cst_10 = arith.constant 0.000000e+00 : f32
      %12 = vector.broadcast %cst_10 : f32 to vector<512x128xf32>
      %c0_11 = arith.constant 0 : index
      %c0_12 = arith.constant 0 : index
      %13 = vector.load %arg7[%c0_11, %c0_12] : memref<512x128xf32, #tpu.memory_space<vmem>>, vector<512x128xf32>
      tpu.vector_store %arg7[%c0_11, %c0_12], %12 {strides = array<i32>} : memref<512x128xf32, #tpu.memory_space<vmem>>, vector<512x128xf32>,
    } else {
    }
    %c0 = arith.constant 0 : index
    %c0_1 = arith.constant 0 : index
    %3 = vector.load %arg7[%c0, %c0_1] : memref<512x128xf32, #tpu.memory_space<vmem>>, vector<512x128xf32>
    %c0_2 = arith.constant 0 : index
    %c0_3 = arith.constant 0 : index
    %4 = vector.load %arg2[%c0_2, %c0_3] : memref<512x256xbf16, #tpu.memory_space<vmem>>, vector<512x256xbf16>
    %c0_4 = arith.constant 0 : index
    %c0_5 = arith.constant 0 : index
    %5 = vector.load %arg3[%c0_4, %c0_5] : memref<256x128xbf16, #tpu.memory_space<vmem>>, vector<256x128xbf16>
    %cst = arith.constant dense<0.000000e+00> : vector<512x128xf32>
    %6 = tpu.matmul %4, %5, %cst {dimension_numbers = #tpu.dot_dimension_numbers<[1], [0], [0], [1], [0, 0, 1, 1], [], []>} : vector<512x256xbf16>, vector<256x128xbf16>, vector<512x128xf32> -> vector<512x128xf32>
    %7 = arith.addf %3, %6 : vector<512x128xf32>
    %c0_6 = arith.constant 0 : index
    %c0_7 = arith.constant 0 : index
    %8 = vector.load %arg7[%c0_6, %c0_7] : memref<512x128xf32, #tpu.memory_space<vmem>>, vector<512x128xf32>
    tpu.vector_store %arg7[%c0_6, %c0_7], %7 {strides = array<i32>} : memref<512x128xf32, #tpu.memory_space<vmem>>, vector<512x128xf32>,
    %c0_i32_8 = arith.constant 0 : i32
    %9 = arith.cmpi eq, %arg1, %c0_i32_8 : i32
    %10 = arith.extui %9 : i1 to i32
    %c0_i32_9 = arith.constant 0 : i32
    %11 = arith.cmpi ne, %10, %c0_i32_9 : i32
    scf.if %11 {
      %c0_10 = arith.constant 0 : index
      %c0_11 = arith.constant 0 : index
      %12 = vector.load %arg7[%c0_10, %c0_11] : memref<512x128xf32, #tpu.memory_space<vmem>>, vector<512x128xf32>
      %cst_12 = arith.constant dense<0.000000e+00> : vector<128xf32>
      %13 = vector.multi_reduction <add>, %12, %cst_12 [0] : vector<512x128xf32> to vector<128xf32>
      %14 = vector.shape_cast %13 : vector<128xf32> to vector<1x128xf32>
      %cst_13 = arith.constant 0.001953125 : f32
      %15 = vector.broadcast %cst_13 : f32 to vector<1x128xf32>
      %16 = arith.mulf %14, %15 : vector<1x128xf32>
      %17 = arith.mulf %12, %12 : vector<512x128xf32>
      %cst_14 = arith.constant dense<0.000000e+00> : vector<128xf32>
      %18 = vector.multi_reduction <add>, %17, %cst_14 [0] : vector<512x128xf32> to vector<128xf32>
      %19 = vector.shape_cast %18 : vector<128xf32> to vector<1x128xf32>
      %cst_15 = arith.constant 0.001953125 : f32
      %20 = vector.broadcast %cst_15 : f32 to vector<1x128xf32>
      %21 = arith.mulf %19, %20 : vector<1x128xf32>
      %22 = arith.mulf %16, %16 : vector<1x128xf32>
      %23 = arith.subf %21, %22 : vector<1x128xf32>
      %cst_16 = arith.constant 0.000000e+00 : f32
      %24 = vector.broadcast %cst_16 : f32 to vector<1x128xf32>
      %25 = arith.maximumf %23, %24 : vector<1x128xf32>
      %26 = vector.broadcast %16 : vector<1x128xf32> to vector<512x128xf32>
      %27 = arith.subf %12, %26 : vector<512x128xf32>
      %cst_17 = arith.constant 9.99999974E-6 : f32
      %28 = vector.broadcast %cst_17 : f32 to vector<1x128xf32>
      %29 = arith.addf %25, %28 : vector<1x128xf32>
      %30 = math.rsqrt %29 : vector<1x128xf32>
      %31 = vector.broadcast %30 : vector<1x128xf32> to vector<512x128xf32>
      %32 = arith.mulf %27, %31 : vector<512x128xf32>
      %c0_18 = arith.constant 0 : index
      %c0_19 = arith.constant 0 : index
      %33 = vector.load %arg4[%c0_18, %c0_19] : memref<1x128xf32, #tpu.memory_space<vmem>>, vector<1x128xf32>
      %34 = vector.broadcast %33 : vector<1x128xf32> to vector<512x128xf32>
      %35 = arith.mulf %32, %34 : vector<512x128xf32>
      %c0_20 = arith.constant 0 : index
      %c0_21 = arith.constant 0 : index
      %36 = vector.load %arg5[%c0_20, %c0_21] : memref<1x128xf32, #tpu.memory_space<vmem>>, vector<1x128xf32>
      %37 = vector.broadcast %36 : vector<1x128xf32> to vector<512x128xf32>
      %38 = arith.addf %35, %37 : vector<512x128xf32>
      %cst_22 = arith.constant 0.000000e+00 : f32
      %39 = vector.broadcast %cst_22 : f32 to vector<512x128xf32>
      %40 = arith.maximumf %38, %39 : vector<512x128xf32>
      %41 = arith.truncf %40 : vector<512x128xf32> to vector<512x128xbf16>
      %c0_23 = arith.constant 0 : index
      %c0_24 = arith.constant 0 : index
      %42 = vector.load %arg6[%c0_23, %c0_24] : memref<512x128xbf16, #tpu.memory_space<vmem>>, vector<512x128xbf16>
      tpu.vector_store %arg6[%c0_23, %c0_24], %41 {strides = array<i32>} : memref<512x128xbf16, #tpu.memory_space<vmem>>, vector<512x128xbf16>,
    } else {
    }
    return
  }
  func.func @transform_0(%arg0: i32, %arg1: i32) -> (i32, i32) {
    %c0_i32 = arith.constant 0 : i32
    %c0_i32_0 = arith.constant 0 : i32
    return %c0_i32, %arg1 : i32, i32
  }
  func.func @transform_1(%arg0: i32, %arg1: i32) -> (i32, i32) {
    %c0_i32 = arith.constant 0 : i32
    return %arg1, %arg0 : i32, i32
  }
  func.func @transform_2(%arg0: i32, %arg1: i32) -> (i32, i32) {
    %c0_i32 = arith.constant 0 : i32
    %c0_i32_0 = arith.constant 0 : i32
    return %c0_i32, %arg0 : i32, i32
  }
  func.func @transform_3(%arg0: i32, %arg1: i32) -> (i32, i32) {
    %c0_i32 = arith.constant 0 : i32
    %c0_i32_0 = arith.constant 0 : i32
    return %c0_i32, %arg0 : i32, i32
  }
  func.func @transform_4(%arg0: i32, %arg1: i32) -> (i32, i32) {
    %c0_i32 = arith.constant 0 : i32
    %c0_i32_0 = arith.constant 0 : i32
    return %c0_i32, %arg0 : i32, i32
  }
}

</mosaic_0001>

<bundles_post_ra>
// kernel: tpu_custom_call.1
= control target key start
LH: loop header
LB: loop body
LE: loop exit
PB: predicated region body
PF: predicated region fallthrough
CT: control target
= control target key end

     0   :  { %9 = vsyncpa [#allocation4], 0  ;;  %s3917_s0 = inlined_call_operand.hbm [shape: bf16[512,256], index: 0, kind: input, shape index: {}]   ;;  %s3918_s1 = inlined_call_operand.hbm [shape: bf16[256,128], index: 1, kind: input, shape index: {}]   ;;  %s3919_s2 = inlined_call_operand.vmem [shape: f32[1,128], index: 2, kind: input, shape index: {}]   ;;  %s3920_s3 = inlined_call_operand.vmem [shape: f32[1,128], index: 3, kind: input, shape index: {}]   ;;  %s3921_s4 = inlined_call_operand.hbm [shape: bf16[512,128], index: 4, kind: output, shape index: {}]  }
   0x1   :  { %10 = vsyncpa [#allocation7], 0 }
   0x2   :  { %11 = vsyncpa [#allocation5], 0  ;;  %s2683_s15 = smov [#allocation3]   ;;  %s2611_s19 = scalar_lea.hbm %s3917_s0, 8192 }
   0x3   :  { %s17_s16 = sshll.u32 %s2683_s15, 4  ;;  %p2612_p0 = scmp.ne.s32.totalorder %s3917_s0, %s2611_s19  ;;  %s18_s16 = int_to_ptr.vmem [resolvable:$true] %s17_s16 }
   0x4   :  { %p2615_p1 = scmp.lt.u32.totalorder %s2611_s19, %s3917_s0 }
   0x6   :  { %p2617_p2 = pnand %p2615_p1, %p2612_p0 }
   0x8   :  { %2620 = shalt.err (!%p2617_p2)
}
   0x9   :  { %s2621_s24 = scalar_lea.vmem %s18_s16, 8192  ;;  %p2626_p4 = scmp.lt.s32.totalorder %s18_s16, %s18_s16 }
   0xa   :  { %p2622_p3 = scmp.ne.s32.totalorder %s18_s16, %s2621_s24  ;;  %p2627_p5 = scmp.lt.s32.totalorder %s2621_s24, %s2621_s24 }
   0xc   :  { %p2628_p6 = por %p2627_p5, %p2626_p4 }
   0xe   :  { %p2629_p7 = pnand %p2628_p6, %p2622_p3 }
  0x10   :  { %2632 = shalt.err (!%p2629_p7)
}
  0x11   :  { %s2684_s25 = smov 128   ;;  %s2685_s26 = smov 8  }
  0x12   :  { %23 = dma.hbm_to_vmem [thread:$0]  %s3917_s0, 8192, %s18_s16, [#allocation4], %s2684_s25, %s2684_s25, %s2685_s26  }
  0x13   :  { %s2686_s29 = smov [#allocation6]   ;;  %s2633_s7 = scalar_lea.hbm %s3918_s1, 2048 }
  0x14   :  { %s29_s30 = sshll.u32 %s2686_s29, 4  ;;  %p2634_p8 = scmp.ne.s32.totalorder %s3918_s1, %s2633_s7  ;;  %s30_s30 = int_to_ptr.vmem [resolvable:$true] %s29_s30 }
  0x15   :  { %p2637_p9 = scmp.lt.u32.totalorder %s2633_s7, %s3918_s1 }
  0x17   :  { %p2639_p10 = pnand %p2637_p9, %p2634_p8 }
  0x19   :  { %2642 = shalt.err (!%p2639_p10)
}
  0x1a   :  { %s2643_s12 = scalar_lea.vmem %s30_s30, 2048  ;;  %p2648_p12 = scmp.lt.s32.totalorder %s30_s30, %s30_s30 }
  0x1b   :  { %p2644_p11 = scmp.ne.s32.totalorder %s30_s30, %s2643_s12  ;;  %p2649_p13 = scmp.lt.s32.totalorder %s2643_s12, %s2643_s12 }
  0x1d   :  { %p2650_p0 = por %p2649_p13, %p2648_p12 }
  0x1f   :  { %p2651_p1 = pnand %p2650_p0, %p2644_p11 }
  0x21   :  { %2654 = shalt.err (!%p2651_p1)
}
  0x22   :  { %s2687_s0 = smov 64   ;;  %s2688_s13 = smov 4  }
  0x23   :  { %35 = dma.hbm_to_vmem [thread:$0]  %s3918_s1, 2048, %s30_s30, [#allocation7], %s2687_s0, %s2687_s0, %s2688_s13  }
  0x24   :  { %2677 = dma.done.wait [#allocation4], 8192  }
  0x25   :  { %2678 = vsyncadd [#allocation4], 4294959104 }
  0x26   :  { %2679 = dma.done.wait [#allocation7], 2048  }
  0x27   :  { %2680 = vsyncadd [#allocation7], 4294965248  ;;  %v2689_v0 = vmov 0   ;;  %v2497_v1 = vld [vmem:[#allocation6] sm:$0xff]   ;;  %v2498_v2 = vld [vmem:[#allocation6 + $0x8] sm:$0xff]  }
  0x28   :  { %691 = vmatprep.subr.bf16.mxu0 %v2689_v0  ;;  %2457 = vmatprep.subr.bf16.mxu1 %v2689_v0  ;;  %v2499_v3 = vld [vmem:[#allocation6 + $0x10] sm:$0xff]   ;;  %v2500_v4 = vld [vmem:[#allocation6 + $0x18] sm:$0xff]   ;;  %v2501_v5 = vld [vmem:[#allocation6 + $0x20] sm:$0xff]  }
  0x29   :  { %692 = vmatpush1.bf16.msra.mxu0 %v2497_v1  ;;  %2473 = vmatpush1.bf16.msra.mxu1 %v2497_v1  ;;  %v2515_v6 = vld [vmem:[#allocation3 + $0x4] ss:$8 sps:$4 sm:$0xff]   ;;  %v2503_v8 = vld [vmem:[#allocation6 + $0x30] sm:$0xff]   ;;  %v2504_v9 = vld [vmem:[#allocation6 + $0x38] sm:$0xff]  }
  0x2a   :  { %693 = vmatprep.subr.bf16.mxu0 %v2689_v0  ;;  %2458 = vmatprep.subr.bf16.mxu1 %v2689_v0  ;;  %v2502_v7 = vld [vmem:[#allocation6 + $0x28] sm:$0xff]   ;;  %v2505_v11 = vld [vmem:[#allocation6 + $0x40] sm:$0xff]   ;;  %v2507_v13 = vld [vmem:[#allocation6 + $0x50] sm:$0xff]  }
  0x2b   :  { %723 = vmatprep.mubr.bf16.mxu0 %v2515_v6  ;;  %v2539_v10 = vld [vmem:[#allocation3 + $0x104] ss:$8 sps:$4 sm:$0xff]   ;;  %v2508_v14 = vld [vmem:[#allocation6 + $0x58] sm:$0xff]   ;;  %v2511_v17 = vld [vmem:[#allocation6 + $0x70] sm:$0xff]  }
  0x2c   :  { %851 = vmatprep.mubr.bf16.mxu1 %v2539_v10  ;;  %v2506_v12 = vld [vmem:[#allocation6 + $0x48] sm:$0xff]   ;;  %v2509_v15 = vld [vmem:[#allocation6 + $0x60] sm:$0xff]   ;;  %v2512_v18 = vld [vmem:[#allocation6 + $0x78] sm:$0xff]  }
  0x2d   :  { %694 = vmatpush1.bf16.msra.mxu0 %v2498_v2  ;;  %2474 = vmatpush1.bf16.msra.mxu1 %v2498_v2  ;;  %v2510_v16 = vld [vmem:[#allocation6 + $0x68] sm:$0xff]   ;;  %v2516_v21 = vld [vmem:[#allocation3 + $0x14] ss:$8 sps:$4 sm:$0xff]   ;;  %v2518_v23 = vld [vmem:[#allocation3 + $0x10] ss:$8 sps:$4 sm:$0xff]  }
  0x2e   :  { %695 = vmatprep.subr.bf16.mxu0 %v2689_v0  ;;  %2459 = vmatprep.subr.bf16.mxu1 %v2689_v0  ;;  %v2513_v19 = vld [vmem:[#allocation3] ss:$8 sps:$4 sm:$0xff]   ;;  %v2543_v22 = vld [vmem:[#allocation3 + $0x114] ss:$8 sps:$4 sm:$0xff]   ;;  %v2545_v24 = vld [vmem:[#allocation3 + $0x110] ss:$8 sps:$4 sm:$0xff]  }
  0x2f   :  { %v2537_v20 = vld [vmem:[#allocation3 + $0x100] ss:$8 sps:$4 sm:$0xff]   ;;  %v2519_v25 = vld [vmem:[#allocation3 + $0x24] ss:$8 sps:$4 sm:$0xff]   ;;  %v2522_v29 = vld [vmem:[#allocation3 + $0x34] ss:$8 sps:$4 sm:$0xff]  }
  0x30   :  { %v2549_v26 = vld [vmem:[#allocation3 + $0x124] ss:$8 sps:$4 sm:$0xff]   ;;  %v2521_v27 = vld [vmem:[#allocation3 + $0x20] ss:$8 sps:$4 sm:$0xff]   ;;  %v2555_v30 = vld [vmem:[#allocation3 + $0x134] ss:$8 sps:$4 sm:$0xff]  }
  0x31   :  { %696 = vmatpush1.bf16.msra.mxu0 %v2499_v3  ;;  %2475 = vmatpush1.bf16.msra.mxu1 %v2499_v3  ;;  %v2551_v28 = vld [vmem:[#allocation3 + $0x120] ss:$8 sps:$4 sm:$0xff]   ;;  %v2524_v31 = vld [vmem:[#allocation3 + $0x30] ss:$8 sps:$4 sm:$0xff]   ;;  %v2525_v33 = vld [vmem:[#allocation3 + $0x44] ss:$8 sps:$4 sm:$0xff]  }
  0x32   :  { %697 = vmatprep.subr.bf16.mxu0 %v2689_v0  ;;  %2460 = vmatprep.subr.bf16.mxu1 %v2689_v0  ;;  %v2557_v32 = vld [vmem:[#allocation3 + $0x130] ss:$8 sps:$4 sm:$0xff]   ;;  %v2561_v34 = vld [vmem:[#allocation3 + $0x144] ss:$8 sps:$4 sm:$0xff]   ;;  %v2527_v35 = vld [vmem:[#allocation3 + $0x40] ss:$8 sps:$4 sm:$0xff]  }
  0x33   :  { %v2563_v36 = vld [vmem:[#allocation3 + $0x140] ss:$8 sps:$4 sm:$0xff]   ;;  %v2528_v37 = vld [vmem:[#allocation3 + $0x54] ss:$8 sps:$4 sm:$0xff]   ;;  %v2530_v39 = vld [vmem:[#allocation3 + $0x50] ss:$8 sps:$4 sm:$0xff]  }
  0x34   :  { %v2567_v38 = vld [vmem:[#allocation3 + $0x154] ss:$8 sps:$4 sm:$0xff]   ;;  %v2569_v40 = vld [vmem:[#allocation3 + $0x150] ss:$8 sps:$4 sm:$0xff]   ;;  %v2531_v41 = vld [vmem:[#allocation3 + $0x64] ss:$8 sps:$4 sm:$0xff]  }
  0x35   :  { %698 = vmatpush1.bf16.msra.mxu0 %v2500_v4  ;;  %2476 = vmatpush1.bf16.msra.mxu1 %v2500_v4  ;;  %v2573_v42 = vld [vmem:[#allocation3 + $0x164] ss:$8 sps:$4 sm:$0xff]   ;;  %v2533_v43 = vld [vmem:[#allocation3 + $0x60] ss:$8 sps:$4 sm:$0xff]   ;;  %v2534_v45 = vld [vmem:[#allocation3 + $0x74] ss:$8 sps:$4 sm:$0xff]  }
  0x36   :  { %699 = vmatprep.subr.bf16.mxu0 %v2689_v0  ;;  %2461 = vmatprep.subr.bf16.mxu1 %v2689_v0  ;;  %v2575_v44 = vld [vmem:[#allocation3 + $0x160] ss:$8 sps:$4 sm:$0xff]   ;;  %v2579_v46 = vld [vmem:[#allocation3 + $0x174] ss:$8 sps:$4 sm:$0xff]   ;;  %v2536_v47 = vld [vmem:[#allocation3 + $0x70] ss:$8 sps:$4 sm:$0xff]  }
  0x37   :  { %v2581_v48 = vld [vmem:[#allocation3 + $0x170] ss:$8 sps:$4 sm:$0xff]   ;;  %v2540_v49 = vld [vmem:[#allocation3 + $0x84] ss:$8 sps:$4 sm:$0xff]   ;;  %v2542_v51 = vld [vmem:[#allocation3 + $0x80] ss:$8 sps:$4 sm:$0xff]  }
  0x38   :  { %v2585_v50 = vld [vmem:[#allocation3 + $0x184] ss:$8 sps:$4 sm:$0xff]   ;;  %v2587_v52 = vld [vmem:[#allocation3 + $0x180] ss:$8 sps:$4 sm:$0xff]   ;;  %v2546_v53 = vld [vmem:[#allocation3 + $0x94] ss:$8 sps:$4 sm:$0xff]  }
  0x39   :  { %700 = vmatpush1.bf16.msra.mxu0 %v2501_v5  ;;  %2477 = vmatpush1.bf16.msra.mxu1 %v2501_v5  ;;  %v2588_v54 = vld [vmem:[#allocation3 + $0x194] ss:$8 sps:$4 sm:$0xff]   ;;  %v2548_v55 = vld [vmem:[#allocation3 + $0x90] ss:$8 sps:$4 sm:$0xff]   ;;  %v2552_v57 = vld [vmem:[#allocation3 + $0xa4] ss:$8 sps:$4 sm:$0xff]  }
  0x3a   :  { %701 = vmatprep.subr.bf16.mxu0 %v2689_v0  ;;  %2462 = vmatprep.subr.bf16.mxu1 %v2689_v0  ;;  %v2590_v56 = vld [vmem:[#allocation3 + $0x190] ss:$8 sps:$4 sm:$0xff]   ;;  %v2591_v58 = vld [vmem:[#allocation3 + $0x1a4] ss:$8 sps:$4 sm:$0xff]   ;;  %v2554_v59 = vld [vmem:[#allocation3 + $0xa0] ss:$8 sps:$4 sm:$0xff]  }
  0x3b   :  { %v2593_v60 = vld [vmem:[#allocation3 + $0x1a0] ss:$8 sps:$4 sm:$0xff]   ;;  %v2558_v61 = vld [vmem:[#allocation3 + $0xb4] ss:$8 sps:$4 sm:$0xff]   ;;  %v2560_v63 = vld [vmem:[#allocation3 + $0xb0] ss:$8 sps:$4 sm:$0xff]  }
  0x3c   :  { %v2594_v62 = vld [vmem:[#allocation3 + $0x1b4] ss:$8 sps:$4 sm:$0xff]   ;;  %v2564_v1 = vld [vmem:[#allocation3 + $0xc4] ss:$8 sps:$4 sm:$0xff]   ;;  %v2566_v3 = vld [vmem:[#allocation3 + $0xc0] ss:$8 sps:$4 sm:$0xff]  }
  0x3d   :  { %702 = vmatpush1.bf16.msra.mxu0 %v2502_v7  ;;  %2478 = vmatpush1.bf16.msra.mxu1 %v2502_v7  ;;  %v2597_v2 = vld [vmem:[#allocation3 + $0x1c4] ss:$8 sps:$4 sm:$0xff]   ;;  %v2599_v4 = vld [vmem:[#allocation3 + $0x1c0] ss:$8 sps:$4 sm:$0xff]   ;;  %v2570_v5 = vld [vmem:[#allocation3 + $0xd4] ss:$8 sps:$4 sm:$0xff]  }
  0x3e   :  { %703 = vmatprep.subr.bf16.mxu0 %v2689_v0  ;;  %2463 = vmatprep.subr.bf16.mxu1 %v2689_v0  ;;  %v2600_v6 = vld [vmem:[#allocation3 + $0x1d4] ss:$8 sps:$4 sm:$0xff]   ;;  %v2572_v7 = vld [vmem:[#allocation3 + $0xd0] ss:$8 sps:$4 sm:$0xff]   ;;  %v2603_v10 = vld [vmem:[#allocation3 + $0x1e4] ss:$8 sps:$4 sm:$0xff]  }
  0x41   :  { %704 = vmatpush1.bf16.msra.mxu0 %v2503_v8  ;;  %2479 = vmatpush1.bf16.msra.mxu1 %v2503_v8  ;;  %v2602_v8 = vld [vmem:[#allocation3 + $0x1d0] ss:$8 sps:$4 sm:$0xff]  }
  0x42   :  { %705 = vmatprep.subr.bf16.mxu0 %v2689_v0  ;;  %2464 = vmatprep.subr.bf16.mxu1 %v2689_v0 }
  0x45   :  { %706 = vmatpush1.bf16.msra.mxu0 %v2504_v9  ;;  %2480 = vmatpush1.bf16.msra.mxu1 %v2504_v9  ;;  %v2576_v9 = vld [vmem:[#allocation3 + $0xe4] ss:$8 sps:$4 sm:$0xff]  }
  0x46   :  { %707 = vmatprep.subr.bf16.mxu0 %v2689_v0  ;;  %2465 = vmatprep.subr.bf16.mxu1 %v2689_v0 }
  0x49   :  { %708 = vmatpush1.bf16.msra.mxu0 %v2505_v11  ;;  %2481 = vmatpush1.bf16.msra.mxu1 %v2505_v11  ;;  %v2578_v11 = vld [vmem:[#allocation3 + $0xe0] ss:$8 sps:$4 sm:$0xff]  }
  0x4a   :  { %709 = vmatprep.subr.bf16.mxu0 %v2689_v0  ;;  %2466 = vmatprep.subr.bf16.mxu1 %v2689_v0 }
  0x4d   :  { %710 = vmatpush1.bf16.msra.mxu0 %v2506_v12  ;;  %2482 = vmatpush1.bf16.msra.mxu1 %v2506_v12  ;;  %v2605_v12 = vld [vmem:[#allocation3 + $0x1e0] ss:$8 sps:$4 sm:$0xff]  }
  0x4e   :  { %711 = vmatprep.subr.bf16.mxu0 %v2689_v0  ;;  %2467 = vmatprep.subr.bf16.mxu1 %v2689_v0 }
  0x51   :  { %712 = vmatpush1.bf16.msra.mxu0 %v2507_v13  ;;  %2483 = vmatpush1.bf16.msra.mxu1 %v2507_v13  ;;  %v2582_v13 = vld [vmem:[#allocation3 + $0xf4] ss:$8 sps:$4 sm:$0xff]  }
  0x52   :  { %713 = vmatprep.subr.bf16.mxu0 %v2689_v0  ;;  %2468 = vmatprep.subr.bf16.mxu1 %v2689_v0 }
  0x55   :  { %714 = vmatpush1.bf16.msra.mxu0 %v2508_v14  ;;  %2484 = vmatpush1.bf16.msra.mxu1 %v2508_v14  ;;  %v2606_v14 = vld [vmem:[#allocation3 + $0x1f4] ss:$8 sps:$4 sm:$0xff]  }
  0x56   :  { %715 = vmatprep.subr.bf16.mxu0 %v2689_v0  ;;  %2469 = vmatprep.subr.bf16.mxu1 %v2689_v0 }
  0x59   :  { %716 = vmatpush1.bf16.msra.mxu0 %v2509_v15  ;;  %2485 = vmatpush1.bf16.msra.mxu1 %v2509_v15  ;;  %v2584_v15 = vld [vmem:[#allocation3 + $0xf0] ss:$8 sps:$4 sm:$0xff]  }
  0x5a   :  { %717 = vmatprep.subr.bf16.mxu0 %v2689_v0  ;;  %2470 = vmatprep.subr.bf16.mxu1 %v2689_v0 }
  0x5d   :  { %718 = vmatpush1.bf16.msra.mxu0 %v2510_v16  ;;  %2486 = vmatpush1.bf16.msra.mxu1 %v2510_v16  ;;  %v2608_v16 = vld [vmem:[#allocation3 + $0x1f0] ss:$8 sps:$4 sm:$0xff]  }
  0x5e   :  { %719 = vmatprep.subr.bf16.mxu0 %v2689_v0  ;;  %2471 = vmatprep.subr.bf16.mxu1 %v2689_v0 }
  0x61   :  { %720 = vmatpush1.bf16.msra.mxu0 %v2511_v17  ;;  %2487 = vmatpush1.bf16.msra.mxu1 %v2511_v17 }
  0x62   :  { %721 = vmatprep.subr.bf16.mxu0 %v2689_v0  ;;  %2472 = vmatprep.subr.bf16.mxu1 %v2689_v0  ;;  %v2596_v0 = vld [vmem:[#allocation3 + $0x1b0] ss:$8 sps:$4 sm:$0xff]  }
  0x65   :  { %722 = vmatpush1.bf16.msra.mxu0 %v2512_v18  ;;  %2488 = vmatpush1.bf16.msra.mxu1 %v2512_v18 }
  0x68   :  { %724 = vmatmul.mubr.bf16.vlgmr.msra.gmra.mrb[0].mxu0 %v2513_v19  ;;  %852 = vmatmul.mubr.bf16.vlgmr.msra.gmra.mrb[0].mxu1 %v2537_v20 }
  0x69   :  { %731 = vmatprep.mubr.bf16.mxu0 %v2516_v21  ;;  %859 = vmatprep.mubr.bf16.mxu1 %v2543_v22 }
  0x70   :  { %732 = vmatmul.mubr.bf16.gmra.mrb[4].mxu0 %v2518_v23  ;;  %860 = vmatmul.mubr.bf16.gmra.mrb[4].mxu1 %v2545_v24 }
  0x71   :  { %739 = vmatprep.mubr.bf16.mxu0 %v2519_v25  ;;  %867 = vmatprep.mubr.bf16.mxu1 %v2549_v26 }
  0x78   :  { %740 = vmatmul.mubr.bf16.gmra.mrb[8].mxu0 %v2521_v27  ;;  %868 = vmatmul.mubr.bf16.gmra.mrb[8].mxu1 %v2551_v28 }
  0x79   :  { %747 = vmatprep.mubr.bf16.mxu0 %v2522_v29  ;;  %875 = vmatprep.mubr.bf16.mxu1 %v2555_v30 }
  0x80   :  { %748 = vmatmul.mubr.bf16.gmra.mrb[12].mxu0 %v2524_v31  ;;  %876 = vmatmul.mubr.bf16.gmra.mrb[12].mxu1 %v2557_v32 }
  0x81   :  { %755 = vmatprep.mubr.bf16.mxu0 %v2525_v33  ;;  %883 = vmatprep.mubr.bf16.mxu1 %v2561_v34 }
  0x88   :  { %756 = vmatmul.mubr.bf16.gmra.mrb[16].mxu0 %v2527_v35  ;;  %884 = vmatmul.mubr.bf16.gmra.mrb[16].mxu1 %v2563_v36 }
  0x89   :  { %763 = vmatprep.mubr.bf16.mxu0 %v2528_v37  ;;  %891 = vmatprep.mubr.bf16.mxu1 %v2567_v38 }
  0x90   :  { %764 = vmatmul.mubr.bf16.gmra.mrb[20].mxu0 %v2530_v39  ;;  %892 = vmatmul.mubr.bf16.gmra.mrb[20].mxu1 %v2569_v40 }
  0x91   :  { %771 = vmatprep.mubr.bf16.mxu0 %v2531_v41  ;;  %899 = vmatprep.mubr.bf16.mxu1 %v2573_v42 }
  0x98   :  { %772 = vmatmul.mubr.bf16.gmra.mrb[24].mxu0 %v2533_v43  ;;  %900 = vmatmul.mubr.bf16.gmra.mrb[24].mxu1 %v2575_v44 }
  0x99   :  { %779 = vmatprep.mubr.bf16.mxu0 %v2534_v45  ;;  %907 = vmatprep.mubr.bf16.mxu1 %v2579_v46 }
  0xa0   :  { %780 = vmatmul.mubr.bf16.gmra.mrb[28].mxu0 %v2536_v47  ;;  %908 = vmatmul.mubr.bf16.gmra.mrb[28].mxu1 %v2581_v48 }
  0xa1   :  { %787 = vmatprep.mubr.bf16.mxu0 %v2540_v49  ;;  %915 = vmatprep.mubr.bf16.mxu1 %v2585_v50 }
  0xa8   :  { %788 = vmatmul.mubr.bf16.gmra.mrb[32].mxu0 %v2542_v51  ;;  %916 = vmatmul.mubr.bf16.gmra.mrb[32].mxu1 %v2587_v52 }
  0xa9   :  { %795 = vmatprep.mubr.bf16.mxu0 %v2546_v53  ;;  %923 = vmatprep.mubr.bf16.mxu1 %v2588_v54 }
  0xb0   :  { %796 = vmatmul.mubr.bf16.gmra.mrb[36].mxu0 %v2548_v55  ;;  %924 = vmatmul.mubr.bf16.gmra.mrb[36].mxu1 %v2590_v56 }
  0xb1   :  { %803 = vmatprep.mubr.bf16.mxu0 %v2552_v57  ;;  %931 = vmatprep.mubr.bf16.mxu1 %v2591_v58 }
  0xb8   :  { %804 = vmatmul.mubr.bf16.gmra.mrb[40].mxu0 %v2554_v59  ;;  %932 = vmatmul.mubr.bf16.gmra.mrb[40].mxu1 %v2593_v60 }
  0xb9   :  { %811 = vmatprep.mubr.bf16.mxu0 %v2558_v61  ;;  %939 = vmatprep.mubr.bf16.mxu1 %v2594_v62 }
  0xc0   :  { %812 = vmatmul.mubr.bf16.gmra.mrb[44].mxu0 %v2560_v63  ;;  %940 = vmatmul.mubr.bf16.gmra.mrb[44].mxu1 %v2596_v0 }
  0xc1   :  { %819 = vmatprep.mubr.bf16.mxu0 %v2564_v1  ;;  %947 = vmatprep.mubr.bf16.mxu1 %v2597_v2 }
  0xc8   :  { %820 = vmatmul.mubr.bf16.gmra.mrb[48].mxu0 %v2566_v3  ;;  %948 = vmatmul.mubr.bf16.gmra.mrb[48].mxu1 %v2599_v4 }
  0xc9   :  { %827 = vmatprep.mubr.bf16.mxu0 %v2570_v5  ;;  %955 = vmatprep.mubr.bf16.mxu1 %v2600_v6 }
  0xd0   :  { %828 = vmatmul.mubr.bf16.gmra.mrb[52].mxu0 %v2572_v7  ;;  %956 = vmatmul.mubr.bf16.gmra.mrb[52].mxu1 %v2602_v8 }
  0xd1   :  { %835 = vmatprep.mubr.bf16.mxu0 %v2576_v9  ;;  %963 = vmatprep.mubr.bf16.mxu1 %v2603_v10 }
  0xd8   :  { %836 = vmatmul.mubr.bf16.gmra.mrb[56].mxu0 %v2578_v11  ;;  %964 = vmatmul.mubr.bf16.gmra.mrb[56].mxu1 %v2605_v12 }
  0xd9   :  { %843 = vmatprep.mubr.bf16.mxu0 %v2582_v13  ;;  %971 = vmatprep.mubr.bf16.mxu1 %v2606_v14 }
  0xe0   :  { %844 = vmatmul.mubr.bf16.gmra.mrb[60].mxu0 %v2584_v15  ;;  %972 = vmatmul.mubr.bf16.gmra.mrb[60].mxu1 %v2608_v16 }
 0x13b   :  { %v2775_v17 = vpop.f32.mrb[0].mxu0  ;;  %v2777_v18 = vpop.f32.mrb[0].mxu1 }
 0x13c   :  { %v727_v19 = vpop.f32.mrb[1].mxu0  ;;  %v855_v20 = vpop.f32.mrb[1].mxu1  ;;  %v1245_v23 = vmul.f32 %v2775_v17, %v2775_v17 }
 0x13d   :  { %v2779_v21 = vpop.f32.mrb[2].mxu0  ;;  %v2781_v22 = vpop.f32.mrb[2].mxu1 }
 0x13e   :  { %v1175_v24 = vadd.f32 %v2779_v21, %v2775_v17  ;;  %v1246_v25 = vmul.f32 %v2779_v21, %v2779_v21  ;;  %v730_v26 = vpop.f32.mrb[3].mxu0  ;;  %v858_v27 = vpop.f32.mrb[3].mxu1 }
 0x140   :  { %v1309_v28 = vadd.f32 %v1246_v25, %v1245_v23 }
 0x143   :  { %v2789_v29 = vpop.f32.mrb[4].mxu0  ;;  %v2791_v30 = vpop.f32.mrb[4].mxu1 }
 0x144   :  { %v1176_v31 = vadd.f32 %v1175_v24, %v2789_v29  ;;  %v1247_v32 = vmul.f32 %v2789_v29, %v2789_v29  ;;  %v735_v33 = vpop.f32.mrb[5].mxu0  ;;  %v863_v34 = vpop.f32.mrb[5].mxu1 }
 0x145   :  { %v2796_v35 = vpop.f32.mrb[6].mxu0  ;;  %v2798_v36 = vpop.f32.mrb[6].mxu1 }
 0x146   :  { %v1310_v37 = vadd.f32 %v1309_v28, %v1247_v32  ;;  %v1177_v38 = vadd.f32 %v1176_v31, %v2796_v35  ;;  %v1248_v39 = vmul.f32 %v2796_v35, %v2796_v35  ;;  %v738_v40 = vpop.f32.mrb[7].mxu0  ;;  %v866_v41 = vpop.f32.mrb[7].mxu1 }
 0x148   :  { %v1311_v42 = vadd.f32 %v1310_v37, %v1248_v39 }
 0x14b   :  { %v2803_v43 = vpop.f32.mrb[8].mxu0  ;;  %v2805_v44 = vpop.f32.mrb[8].mxu1 }
 0x14c   :  { %v1178_v45 = vadd.f32 %v1177_v38, %v2803_v43  ;;  %v1249_v46 = vmul.f32 %v2803_v43, %v2803_v43  ;;  %v743_v47 = vpop.f32.mrb[9].mxu0  ;;  %v871_v48 = vpop.f32.mrb[9].mxu1 }
 0x14d   :  { %v2810_v49 = vpop.f32.mrb[10].mxu0  ;;  %v2812_v50 = vpop.f32.mrb[10].mxu1 }
 0x14e   :  { %v1312_v51 = vadd.f32 %v1311_v42, %v1249_v46  ;;  %v1179_v52 = vadd.f32 %v1178_v45, %v2810_v49  ;;  %v1250_v53 = vmul.f32 %v2810_v49, %v2810_v49  ;;  %v746_v54 = vpop.f32.mrb[11].mxu0  ;;  %v874_v55 = vpop.f32.mrb[11].mxu1 }
 0x150   :  { %v1313_v56 = vadd.f32 %v1312_v51, %v1250_v53 }
 0x153   :  { %v2817_v57 = vpop.f32.mrb[12].mxu0  ;;  %v2819_v58 = vpop.f32.mrb[12].mxu1 }
 0x154   :  { %v1180_v59 = vadd.f32 %v1179_v52, %v2817_v57  ;;  %v1251_v60 = vmul.f32 %v2817_v57, %v2817_v57  ;;  %v751_v61 = vpop.f32.mrb[13].mxu0  ;;  %v879_v62 = vpop.f32.mrb[13].mxu1 }
 0x155   :  { %v2824_v63 = vpop.f32.mrb[14].mxu0  ;;  %v2826_v0 = vpop.f32.mrb[14].mxu1 }
 0x156   :  { %v1314_v1 = vadd.f32 %v1313_v56, %v1251_v60  ;;  %v1181_v2 = vadd.f32 %v1180_v59, %v2824_v63  ;;  %v1252_v3 = vmul.f32 %v2824_v63, %v2824_v63  ;;  %v754_v4 = vpop.f32.mrb[15].mxu0  ;;  %v882_v5 = vpop.f32.mrb[15].mxu1 }
 0x158   :  { %v1315_v6 = vadd.f32 %v1314_v1, %v1252_v3 }
 0x15b   :  { %v2831_v7 = vpop.f32.mrb[16].mxu0  ;;  %v2833_v8 = vpop.f32.mrb[16].mxu1 }
 0x15c   :  { %v1182_v9 = vadd.f32 %v1181_v2, %v2831_v7  ;;  %v1253_v10 = vmul.f32 %v2831_v7, %v2831_v7  ;;  %v759_v11 = vpop.f32.mrb[17].mxu0  ;;  %v887_v12 = vpop.f32.mrb[17].mxu1 }
 0x15d   :  { %v2838_v13 = vpop.f32.mrb[18].mxu0  ;;  %v2840_v14 = vpop.f32.mrb[18].mxu1 }
 0x15e   :  { %v1316_v15 = vadd.f32 %v1315_v6, %v1253_v10  ;;  %v1183_v16 = vadd.f32 %v1182_v9, %v2838_v13  ;;  %v1254_v19 = vmul.f32 %v2838_v13, %v2838_v13  ;;  %v762_v20 = vpop.f32.mrb[19].mxu0  ;;  %v890_v23 = vpop.f32.mrb[19].mxu1 }
 0x160   :  { %v1317_v24 = vadd.f32 %v1316_v15, %v1254_v19 }
 0x163   :  { %v2845_v25 = vpop.f32.mrb[20].mxu0  ;;  %v2847_v26 = vpop.f32.mrb[20].mxu1 }
 0x164   :  { %v1184_v27 = vadd.f32 %v1183_v16, %v2845_v25  ;;  %v1255_v28 = vmul.f32 %v2845_v25, %v2845_v25  ;;  %v767_v31 = vpop.f32.mrb[21].mxu0  ;;  %v895_v32 = vpop.f32.mrb[21].mxu1 }
 0x165   :  { %v2852_v33 = vpop.f32.mrb[22].mxu0  ;;  %v2854_v34 = vpop.f32.mrb[22].mxu1 }
 0x166   :  { %v1318_v37 = vadd.f32 %v1317_v24, %v1255_v28  ;;  %v1185_v38 = vadd.f32 %v1184_v27, %v2852_v33  ;;  %v1256_v39 = vmul.f32 %v2852_v33, %v2852_v33  ;;  %v770_v40 = vpop.f32.mrb[23].mxu0  ;;  %v898_v41 = vpop.f32.mrb[23].mxu1 }
 0x168   :  { %v1319_v42 = vadd.f32 %v1318_v37, %v1256_v39 }
 0x16b   :  { %v2859_v45 = vpop.f32.mrb[24].mxu0  ;;  %v2861_v46 = vpop.f32.mrb[24].mxu1 }
 0x16c   :  { %v1186_v47 = vadd.f32 %v1185_v38, %v2859_v45  ;;  %v1257_v48 = vmul.f32 %v2859_v45, %v2859_v45  ;;  %v775_v51 = vpop.f32.mrb[25].mxu0  ;;  %v903_v52 = vpop.f32.mrb[25].mxu1 }
 0x16d   :  { %v2866_v53 = vpop.f32.mrb[26].mxu0  ;;  %v2868_v54 = vpop.f32.mrb[26].mxu1 }
 0x16e   :  { %v1320_v55 = vadd.f32 %v1319_v42, %v1257_v48  ;;  %v1187_v56 = vadd.f32 %v1186_v47, %v2866_v53  ;;  %v1258_v59 = vmul.f32 %v2866_v53, %v2866_v53  ;;  %v778_v60 = vpop.f32.mrb[27].mxu0  ;;  %v906_v61 = vpop.f32.mrb[27].mxu1 }
 0x170   :  { %v1321_v62 = vadd.f32 %v1320_v55, %v1258_v59 }
 0x173   :  { %v2873_v1 = vpop.f32.mrb[28].mxu0  ;;  %v2875_v2 = vpop.f32.mrb[28].mxu1 }
 0x174   :  { %v1188_v3 = vadd.f32 %v1187_v56, %v2873_v1  ;;  %v1259_v4 = vmul.f32 %v2873_v1, %v2873_v1  ;;  %v783_v5 = vpop.f32.mrb[29].mxu0  ;;  %v911_v6 = vpop.f32.mrb[29].mxu1 }
 0x175   :  { %v2880_v9 = vpop.f32.mrb[30].mxu0  ;;  %v2882_v10 = vpop.f32.mrb[30].mxu1 }
 0x176   :  { %v1322_v11 = vadd.f32 %v1321_v62, %v1259_v4  ;;  %v1189_v12 = vadd.f32 %v1188_v3, %v2880_v9  ;;  %v1260_v15 = vmul.f32 %v2880_v9, %v2880_v9  ;;  %v786_v16 = vpop.f32.mrb[31].mxu0  ;;  %v914_v19 = vpop.f32.mrb[31].mxu1 }
 0x178   :  { %v1323_v20 = vadd.f32 %v1322_v11, %v1260_v15 }
 0x17b   :  { %v2887_v23 = vpop.f32.mrb[32].mxu0  ;;  %v2889_v24 = vpop.f32.mrb[32].mxu1 }
 0x17c   :  { %v1190_v27 = vadd.f32 %v1189_v12, %v2887_v23  ;;  %v1261_v28 = vmul.f32 %v2887_v23, %v2887_v23  ;;  %v791_v31 = vpop.f32.mrb[33].mxu0  ;;  %v919_v32 = vpop.f32.mrb[33].mxu1 }
 0x17d   :  { %v2894_v37 = vpop.f32.mrb[34].mxu0  ;;  %v2896_v38 = vpop.f32.mrb[34].mxu1 }
 0x17e   :  { %3970 = vst [vmem:[#allocation12_spill] sm:$0xff] %v2894_v37  ;;  %3971 = vst [vmem:[#allocation13_spill] sm:$0xff] %v2896_v38  ;;  %v1324_v39 = vadd.f32 %v1323_v20, %v1261_v28  ;;  %v1191_v40 = vadd.f32 %v1190_v27, %v2894_v37  ;;  %v1262_v41 = vmul.f32 %v2894_v37, %v2894_v37  ;;  %v794_v42 = vpop.f32.mrb[35].mxu0  ;;  %v922_v47 = vpop.f32.mrb[35].mxu1 }
 0x180   :  { %v1325_v48 = vadd.f32 %v1324_v39, %v1262_v41 }
 0x183   :  { %v2901_v51 = vpop.f32.mrb[36].mxu0  ;;  %v2903_v52 = vpop.f32.mrb[36].mxu1 }
 0x184   :  { %3972 = vst [vmem:[#allocation14_spill] sm:$0xff] %v2901_v51  ;;  %3973 = vst [vmem:[#allocation15_spill] sm:$0xff] %v2903_v52  ;;  %v1192_v55 = vadd.f32 %v1191_v40, %v2901_v51  ;;  %v1263_v56 = vmul.f32 %v2901_v51, %v2901_v51  ;;  %v799_v59 = vpop.f32.mrb[37].mxu0  ;;  %v927_v60 = vpop.f32.mrb[37].mxu1 }
 0x185   :  { %v2908_v61 = vpop.f32.mrb[38].mxu0  ;;  %v2910_v62 = vpop.f32.mrb[38].mxu1 }
 0x186   :  { %3974 = vst [vmem:[#allocation16_spill] sm:$0xff] %v2908_v61  ;;  %3975 = vst [vmem:[#allocation17_spill] sm:$0xff] %v2910_v62  ;;  %v1326_v3 = vadd.f32 %v1325_v48, %v1263_v56  ;;  %v1193_v4 = vadd.f32 %v1192_v55, %v2908_v61  ;;  %v1264_v5 = vmul.f32 %v2908_v61, %v2908_v61  ;;  %v802_v6 = vpop.f32.mrb[39].mxu0  ;;  %v930_v11 = vpop.f32.mrb[39].mxu1 }
 0x188   :  { %v1327_v12 = vadd.f32 %v1326_v3, %v1264_v5 }
 0x18b   :  { %v2915_v15 = vpop.f32.mrb[40].mxu0  ;;  %v2917_v16 = vpop.f32.mrb[40].mxu1 }
 0x18c   :  { %3976 = vst [vmem:[#allocation18_spill] sm:$0xff] %v2915_v15  ;;  %3977 = vst [vmem:[#allocation19_spill] sm:$0xff] %v2917_v16  ;;  %v1194_v19 = vadd.f32 %v1193_v4, %v2915_v15  ;;  %v1265_v20 = vmul.f32 %v2915_v15, %v2915_v15  ;;  %v807_v27 = vpop.f32.mrb[41].mxu0  ;;  %v935_v28 = vpop.f32.mrb[41].mxu1 }
 0x18d   :  { %v2922_v31 = vpop.f32.mrb[42].mxu0  ;;  %v2924_v32 = vpop.f32.mrb[42].mxu1 }
 0x18e   :  { %3978 = vst [vmem:[#allocation20_spill] sm:$0xff] %v2922_v31  ;;  %3979 = vst [vmem:[#allocation21_spill] sm:$0xff] %v2924_v32  ;;  %v1328_v39 = vadd.f32 %v1327_v12, %v1265_v20  ;;  %v1195_v40 = vadd.f32 %v1194_v19, %v2922_v31  ;;  %v1266_v41 = vmul.f32 %v2922_v31, %v2922_v31  ;;  %v810_v42 = vpop.f32.mrb[43].mxu0  ;;  %v938_v47 = vpop.f32.mrb[43].mxu1 }
 0x190   :  { %v1329_v48 = vadd.f32 %v1328_v39, %v1266_v41 }
 0x193   :  { %v2929_v55 = vpop.f32.mrb[44].mxu0  ;;  %v2931_v56 = vpop.f32.mrb[44].mxu1 }
 0x194   :  { %3980 = vst [vmem:[#allocation22_spill] sm:$0xff] %v2929_v55  ;;  %3981 = vst [vmem:[#allocation23_spill] sm:$0xff] %v2931_v56  ;;  %v1196_v59 = vadd.f32 %v1195_v40, %v2929_v55  ;;  %v1267_v60 = vmul.f32 %v2929_v55, %v2929_v55  ;;  %v815_v3 = vpop.f32.mrb[45].mxu0  ;;  %v943_v4 = vpop.f32.mrb[45].mxu1 }
 0x195   :  { %v2936_v5 = vpop.f32.mrb[46].mxu0  ;;  %v2938_v6 = vpop.f32.mrb[46].mxu1 }
 0x196   :  { %3982 = vst [vmem:[#allocation24_spill] sm:$0xff] %v2936_v5  ;;  %v1330_v11 = vadd.f32 %v1329_v48, %v1267_v60  ;;  %v1197_v12 = vadd.f32 %v1196_v59, %v2936_v5  ;;  %v1268_v19 = vmul.f32 %v2936_v5, %v2936_v5  ;;  %v818_v20 = vpop.f32.mrb[47].mxu0  ;;  %v946_v27 = vpop.f32.mrb[47].mxu1 }
 0x198   :  { %v1331_v28 = vadd.f32 %v1330_v11, %v1268_v19 }
 0x19b   :  { %v2943_v39 = vpop.f32.mrb[48].mxu0  ;;  %v2945_v40 = vpop.f32.mrb[48].mxu1 }
 0x19c   :  { %3983 = vst [vmem:[#allocation25_spill] sm:$0xff] %v2943_v39  ;;  %v1198_v41 = vadd.f32 %v1197_v12, %v2943_v39  ;;  %v1269_v42 = vmul.f32 %v2943_v39, %v2943_v39  ;;  %v823_v47 = vpop.f32.mrb[49].mxu0  ;;  %v951_v3 = vpop.f32.mrb[49].mxu1 }
 0x19d   :  { %v2950_v48 = vpop.f32.mrb[50].mxu0  ;;  %v2952_v59 = vpop.f32.mrb[50].mxu1 }
 0x19e   :  { %3984 = vst [vmem:[#allocation26_spill] sm:$0xff] %v2950_v48  ;;  %3985 = vst [vmem:[#allocation27_spill] sm:$0xff] %v2952_v59  ;;  %v1332_v60 = vadd.f32 %v1331_v28, %v1269_v42  ;;  %v1199_v4 = vadd.f32 %v1198_v41, %v2950_v48  ;;  %v1270_v11 = vmul.f32 %v2950_v48, %v2950_v48  ;;  %v826_v19 = vpop.f32.mrb[51].mxu0  ;;  %v954_v20 = vpop.f32.mrb[51].mxu1 }
 0x1a0   :  { %v1333_v27 = vadd.f32 %v1332_v60, %v1270_v11 }
 0x1a3   :  { %v2957_v5 = vpop.f32.mrb[52].mxu0  ;;  %v2959_v12 = vpop.f32.mrb[52].mxu1 }
 0x1a4   :  { %3986 = vst [vmem:[#allocation28_spill] sm:$0xff] %v2957_v5  ;;  %3987 = vst [vmem:[#allocation29_spill] sm:$0xff] %v2959_v12  ;;  %v1200_v47 = vadd.f32 %v1199_v4, %v2957_v5  ;;  %v1271_v3 = vmul.f32 %v2957_v5, %v2957_v5  ;;  %v831_v39 = vpop.f32.mrb[53].mxu0  ;;  %v959_v55 = vpop.f32.mrb[53].mxu1 }
 0x1a5   :  { %v2964_v28 = vpop.f32.mrb[54].mxu0  ;;  %v2966_v41 = vpop.f32.mrb[54].mxu1 }
 0x1a6   :  { %3988 = vst [vmem:[#allocation30_spill] sm:$0xff] %v2964_v28  ;;  %3989 = vst [vmem:[#allocation31_spill] sm:$0xff] %v2966_v41  ;;  %v1334_v42 = vadd.f32 %v1333_v27, %v1271_v3  ;;  %v1201_v19 = vadd.f32 %v1200_v47, %v2964_v28  ;;  %v1272_v60 = vmul.f32 %v2964_v28, %v2964_v28  ;;  %v834_v11 = vpop.f32.mrb[55].mxu0  ;;  %v962_v20 = vpop.f32.mrb[55].mxu1 }
 0x1a8   :  { %v1335_v48 = vadd.f32 %v1334_v42, %v1272_v60 }
 0x1ab   :  { %v2971_v31 = vpop.f32.mrb[56].mxu0  ;;  %v2973_v4 = vpop.f32.mrb[56].mxu1 }
 0x1ac   :  { %3990 = vst [vmem:[#allocation32_spill] sm:$0xff] %v2971_v31  ;;  %3991 = vst [vmem:[#allocation33_spill] sm:$0xff] %v2973_v4  ;;  %v1202_v39 = vadd.f32 %v1201_v19, %v2971_v31  ;;  %v1273_v55 = vmul.f32 %v2971_v31, %v2971_v31  ;;  %v839_v5 = vpop.f32.mrb[57].mxu0  ;;  %v967_v15 = vpop.f32.mrb[57].mxu1 }
 0x1ad   :  { %v2978_v27 = vpop.f32.mrb[58].mxu0  ;;  %v2980_v47 = vpop.f32.mrb[58].mxu1 }
 0x1ae   :  { %3992 = vst [vmem:[#allocation34_spill] sm:$0xff] %v2978_v27  ;;  %3993 = vst [vmem:[#allocation35_spill] sm:$0xff] %v2980_v47  ;;  %v1336_v3 = vadd.f32 %v1335_v48, %v1273_v55  ;;  %v1203_v11 = vadd.f32 %v1202_v39, %v2978_v27  ;;  %v1274_v42 = vmul.f32 %v2978_v27, %v2978_v27  ;;  %v842_v60 = vpop.f32.mrb[59].mxu0  ;;  %v970_v20 = vpop.f32.mrb[59].mxu1 }
 0x1b0   :  { %v1337_v28 = vadd.f32 %v1336_v3, %v1274_v42 }
 0x1b3   :  { %v2985_v61 = vpop.f32.mrb[60].mxu0  ;;  %v2987_v19 = vpop.f32.mrb[60].mxu1 }
 0x1b4   :  { %3994 = vst [vmem:[#allocation36_spill] sm:$0xff] %v2985_v61  ;;  %v1204_v5 = vadd.f32 %v1203_v11, %v2985_v61  ;;  %v1275_v15 = vmul.f32 %v2985_v61, %v2985_v61  ;;  %v847_v31 = vpop.f32.mrb[61].mxu0  ;;  %v975_v51 = vpop.f32.mrb[61].mxu1  ;;  %v1277_v11 = vmul.f32 %v2777_v18, %v2777_v18 }
 0x1b5   :  { %v2992_v48 = vpop.f32.mrb[62].mxu0  ;;  %v2994_v39 = vpop.f32.mrb[62].mxu1  ;;  %v1278_v51 = vmul.f32 %v2781_v22, %v2781_v22 }
 0x1b6   :  { %3995 = vst [vmem:[#allocation37_spill] sm:$0xff] %v2992_v48  ;;  %v1338_v55 = vadd.f32 %v1337_v28, %v1275_v15  ;;  %v1205_v60 = vadd.f32 %v1204_v5, %v2992_v48  ;;  %v1276_v3 = vmul.f32 %v2992_v48, %v2992_v48  ;;  %v850_v42 = vpop.f32.mrb[63].mxu0  ;;  %v978_v20 = vpop.f32.mrb[63].mxu1  ;;  %v1279_v28 = vmul.f32 %v2791_v30, %v2791_v30 }
 0x1b7   :  { %v1280_v42 = vmul.f32 %v2798_v36, %v2798_v36 }
 0x1b8   :  { %v1206_v27 = vadd.f32 %v1205_v60, %v2777_v18  ;;  %v1339_v61 = vadd.f32 %v1338_v55, %v1276_v3  ;;  %v1281_v55 = vmul.f32 %v2805_v44, %v2805_v44 }
 0x1ba   :  { %v1207_v31 = vadd.f32 %v1206_v27, %v2781_v22  ;;  %v1340_v37 = vadd.f32 %v1339_v61, %v1277_v11  ;;  %v1282_v61 = vmul.f32 %v2812_v50, %v2812_v50 }
 0x1bc   :  { %v1208_v5 = vadd.f32 %v1207_v31, %v2791_v30  ;;  %v1341_v15 = vadd.f32 %v1340_v37, %v1278_v51  ;;  %v1283_v37 = vmul.f32 %v2819_v58, %v2819_v58 }
 0x1be   :  { %v1209_v20 = vadd.f32 %v1208_v5, %v2798_v36  ;;  %v1342_v48 = vadd.f32 %v1341_v15, %v1279_v28  ;;  %v1284_v28 = vmul.f32 %v2826_v0, %v2826_v0 }
 0x1c0   :  { %v1210_v60 = vadd.f32 %v1209_v20, %v2805_v44  ;;  %v1343_v3 = vadd.f32 %v1342_v48, %v1280_v42  ;;  %v1285_v48 = vmul.f32 %v2833_v8, %v2833_v8 }
 0x1c2   :  { %v1211_v27 = vadd.f32 %v1210_v60, %v2812_v50  ;;  %v1344_v11 = vadd.f32 %v1343_v3, %v1281_v55  ;;  %v1286_v55 = vmul.f32 %v2840_v14, %v2840_v14 }
 0x1c4   :  { %v1212_v51 = vadd.f32 %v1211_v27, %v2819_v58  ;;  %v1345_v31 = vadd.f32 %v1344_v11, %v1282_v61  ;;  %v1287_v61 = vmul.f32 %v2847_v26, %v2847_v26 }
 0x1c6   :  { %v1213_v5 = vadd.f32 %v1212_v51, %v2826_v0  ;;  %v1346_v15 = vadd.f32 %v1345_v31, %v1283_v37  ;;  %v1288_v37 = vmul.f32 %v2854_v34, %v2854_v34 }
 0x1c8   :  { %v1347_v42 = vadd.f32 %v1346_v15, %v1284_v28  ;;  %v1214_v20 = vadd.f32 %v1213_v5, %v2833_v8  ;;  %v1289_v28 = vmul.f32 %v2861_v46, %v2861_v46 }
 0x1ca   :  { %v1215_v60 = vadd.f32 %v1214_v20, %v2840_v14  ;;  %v1348_v3 = vadd.f32 %v1347_v42, %v1285_v48  ;;  %v1290_v48 = vmul.f32 %v2868_v54, %v2868_v54 }
 0x1cc   :  { %v1216_v27 = vadd.f32 %v1215_v60, %v2847_v26  ;;  %v1349_v11 = vadd.f32 %v1348_v3, %v1286_v55  ;;  %v1291_v55 = vmul.f32 %v2875_v2, %v2875_v2 }
 0x1ce   :  { %v1217_v51 = vadd.f32 %v1216_v27, %v2854_v34  ;;  %v1350_v31 = vadd.f32 %v1349_v11, %v1287_v61  ;;  %v1292_v61 = vmul.f32 %v2882_v10, %v2882_v10 }
 0x1d0   :  { %v1218_v5 = vadd.f32 %v1217_v51, %v2861_v46  ;;  %v1351_v15 = vadd.f32 %v1350_v31, %v1288_v37  ;;  %v1293_v51 = vmul.f32 %v2889_v24, %v2889_v24 }
 0x1d2   :  { %v1219_v42 = vadd.f32 %v1218_v5, %v2868_v54  ;;  %v1352_v20 = vadd.f32 %v1351_v15, %v1289_v28  ;;  %v1294_v15 = vmul.f32 %v2896_v38, %v2896_v38 }
 0x1d4   :  { %v1220_v60 = vadd.f32 %v1219_v42, %v2875_v2  ;;  %v1353_v3 = vadd.f32 %v1352_v20, %v1290_v48  ;;  %v1295_v20 = vmul.f32 %v2903_v52, %v2903_v52 }
 0x1d6   :  { %v1221_v27 = vadd.f32 %v1220_v60, %v2882_v10  ;;  %v1354_v11 = vadd.f32 %v1353_v3, %v1291_v55  ;;  %v1296_v3 = vmul.f32 %v2910_v62, %v2910_v62 }
 0x1d8   :  { %v1222_v37 = vadd.f32 %v1221_v27, %v2889_v24  ;;  %v1355_v31 = vadd.f32 %v1354_v11, %v1292_v61  ;;  %v1297_v11 = vmul.f32 %v2917_v16, %v2917_v16 }
 0x1da   :  { %v1356_v5 = vadd.f32 %v1355_v31, %v1293_v51  ;;  %v1223_v28 = vadd.f32 %v1222_v37, %v2896_v38  ;;  %v1298_v31 = vmul.f32 %v2924_v32, %v2924_v32 }
 0x1dc   :  { %v1357_v42 = vadd.f32 %v1356_v5, %v1294_v15  ;;  %v1224_v48 = vadd.f32 %v1223_v28, %v2903_v52  ;;  %v1299_v15 = vmul.f32 %v2931_v56, %v2931_v56 }
 0x1de   :  { %v1358_v60 = vadd.f32 %v1357_v42, %v1295_v20  ;;  %v1225_v55 = vadd.f32 %v1224_v48, %v2910_v62  ;;  %v1300_v20 = vmul.f32 %v2938_v6, %v2938_v6 }
 0x1e0   :  { %v1359_v27 = vadd.f32 %v1358_v60, %v1296_v3  ;;  %v1226_v61 = vadd.f32 %v1225_v55, %v2917_v16  ;;  %v1301_v3 = vmul.f32 %v2945_v40, %v2945_v40 }
 0x1e2   :  { %v1360_v37 = vadd.f32 %v1359_v27, %v1297_v11  ;;  %v1227_v51 = vadd.f32 %v1226_v61, %v2924_v32  ;;  %v1302_v11 = vmul.f32 %v2952_v59, %v2952_v59 }
 0x1e4   :  { %v1361_v5 = vadd.f32 %v1360_v37, %v1298_v31  ;;  %v1228_v28 = vadd.f32 %v1227_v51, %v2931_v56  ;;  %v1303_v31 = vmul.f32 %v2959_v12, %v2959_v12 }
 0x1e6   :  { %v1362_v42 = vadd.f32 %v1361_v5, %v1299_v15  ;;  %v1229_v48 = vadd.f32 %v1228_v28, %v2938_v6  ;;  %v1304_v15 = vmul.f32 %v2966_v41, %v2966_v41 }
 0x1e8   :  { %v1363_v60 = vadd.f32 %v1362_v42, %v1300_v20  ;;  %v1230_v55 = vadd.f32 %v1229_v48, %v2945_v40  ;;  %v1305_v20 = vmul.f32 %v2973_v4, %v2973_v4 }
 0x1ea   :  { %v1364_v27 = vadd.f32 %v1363_v60, %v1301_v3  ;;  %v1231_v61 = vadd.f32 %v1230_v55, %v2952_v59  ;;  %v1306_v3 = vmul.f32 %v2980_v47, %v2980_v47 }
 0x1ec   :  { %v1365_v37 = vadd.f32 %v1364_v27, %v1302_v11  ;;  %v1232_v51 = vadd.f32 %v1231_v61, %v2959_v12  ;;  %v1307_v27 = vmul.f32 %v2987_v19, %v2987_v19 }
 0x1ee   :  { %v1366_v5 = vadd.f32 %v1365_v37, %v1303_v31  ;;  %v1233_v28 = vadd.f32 %v1232_v51, %v2966_v41  ;;  %v1308_v31 = vmul.f32 %v2994_v39, %v2994_v39 }
 0x1f0   :  { %v1367_v42 = vadd.f32 %v1366_v5, %v1304_v15  ;;  %v1234_v48 = vadd.f32 %v1233_v28, %v2973_v4 }
 0x1f2   :  { %v1368_v60 = vadd.f32 %v1367_v42, %v1305_v20  ;;  %v1235_v55 = vadd.f32 %v1234_v48, %v2980_v47 }
 0x1f4   :  { %v1369_v61 = vadd.f32 %v1368_v60, %v1306_v3  ;;  %v1236_v11 = vadd.f32 %v1235_v55, %v2987_v19 }
 0x1f6   :  { %v1370_v37 = vadd.f32 %v1369_v61, %v1307_v27  ;;  %v1237_v51 = vadd.f32 %v1236_v11, %v2994_v39 }
 0x1f8   :  { %v1238_v5 = vrot.slane %v1237_v51, 4  ;;  %v1371_v28 = vadd.f32 %v1370_v37, %v1308_v31  ;;  %v4005_v31 = vld [vmem:[#allocation28_spill] sm:$0xff] }
 0x1fa   :  { %v1239_v15 = vadd.f32 %v1238_v5, %v1237_v51  ;;  %v1372_v42 = vrot.slane %v1371_v28, 4  ;;  %v4004_v5 = vld [vmem:[#allocation26_spill] sm:$0xff] }
 0x1fc   :  { %v1240_v48 = vrot.slane %v1239_v15, 2  ;;  %v1373_v20 = vadd.f32 %v1372_v42, %v1371_v28  ;;  %v4012_v42 = vld [vmem:[#allocation29_spill] sm:$0xff] }
 0x1fe   :  { %v1241_v4 = vadd.f32 %v1240_v48, %v1239_v15  ;;  %v1374_v47 = vrot.slane %v1373_v20, 2  ;;  %v4011_v15 = vld [vmem:[#allocation27_spill] sm:$0xff] }
 0x1ff   :  { %v4013_v48 = vld [vmem:[#allocation31_spill] sm:$0xff] }
 0x200   :  { %v1242_v41 = vrot.slane %v1241_v4, 1  ;;  %v1375_v12 = vadd.f32 %v1374_v47, %v1373_v20  ;;  %v4006_v47 = vld [vmem:[#allocation30_spill] sm:$0xff] }
 0x202   :  { %v1243_v59 = vadd.f32 %v1242_v41, %v1241_v4  ;;  %v1376_v60 = vrot.slane %v1375_v12, 1  ;;  %v4009_v41 = vld [vmem:[#allocation36_spill] sm:$0xff] }
 0x204   :  { %v3095_v3 = vmul.f32 0.001953125, %v1243_v59  ;;  %v1377_v55 = vadd.f32 %v1376_v60, %v1375_v12  ;;  %v3997_v60 = vld [vmem:[#allocation14_spill] sm:$0xff]  ;;  %v4007_v12 = vld [vmem:[#allocation32_spill] sm:$0xff] }
 0x205   :  { %v4008_v59 = vld [vmem:[#allocation34_spill] sm:$0xff] }
 0x206   :  { %v1378_v27 = vmul.f32 0.001953125, %v1377_v55  ;;  %v1379_v61 = vmul.f32 %v3095_v3, %v3095_v3  ;;  %v3998_v55 = vld [vmem:[#allocation16_spill] sm:$0xff]  ;;  %v4016_v52 = vsub.f32 %v2987_v19, %v3095_v3  ;;  %v4017_v16 = vsub.f32 %v2994_v39, %v3095_v3 }
 0x207   :  { %v4018_v56 = vsub.f32 %v2775_v17, %v3095_v3  ;;  %v4019_v37 = vsub.f32 %v2779_v21, %v3095_v3  ;;  %v4023_v17 = vsub.f32 %v2796_v35, %v3095_v3  ;;  %v4024_v21 = vsub.f32 %v2803_v43, %v3095_v3 }
 0x208   :  { %v1380_v4 = vsub.f32 %v1378_v27, %v1379_v61  ;;  %v3999_v27 = vld [vmem:[#allocation18_spill] sm:$0xff]  ;;  %v3232_v61 = vld [vmem:[%s3919_s2] ss:$0 sm:$0xff]  ;;  %v4026_v35 = vsub.f32 %v2817_v57, %v3095_v3  ;;  %v4027_v43 = vsub.f32 %v2824_v63, %v3095_v3 }
 0x20a   :  { %v1381_v20 = vmax.f32 %v1380_v4, 0.0  ;;  %v3996_v4 = vld [vmem:[#allocation12_spill] sm:$0xff] }
 0x20c   :  { %v1446_v28 = vadd.f32 1e-05, %v1381_v20  ;;  %v4003_v20 = vld [vmem:[#allocation25_spill] sm:$0xff] }
 0x20e   :  { %2609 = vrsqrt.f32 %v1446_v28  ;;  %v4010_v28 = vld [vmem:[#allocation37_spill] sm:$0xff] }
 0x218   :  { %v3227_v38 = vpop.eup %2609 }
 0x219   :  { %v1510_v62 = vmul.f32 %v3227_v38, %v4016_v52  ;;  %v1511_v32 = vmul.f32 %v3227_v38, %v4017_v16  ;;  %v3246_v11 = vmul.f32 %v3227_v38, %v4018_v56  ;;  %v3252_v51 = vmul.f32 %v3227_v38, %v4019_v37  ;;  %v3257_v52 = vld [vmem:[%s3920_s3] ss:$0 sm:$0xff]  ;;  %s2690_s3 = smov [#allocation8]  }
 0x21a   :  { %4020 = vst [vmem:[#allocation12_spill] sm:$0xff] %v3257_v52  ;;  %v4021_v16 = vsub.f32 %v2789_v29, %v3095_v3  ;;  %v3269_v56 = vmul.f32 %v3227_v38, %v4023_v17  ;;  %v3275_v39 = vmul.f32 %v3227_v38, %v4024_v21  ;;  %v4025_v37 = vsub.f32 %v2810_v49, %v3095_v3  ;;  %s2043_s18 = sshll.u32 %s2690_s3, 4  ;;  %s2044_s18 = int_to_ptr.vmem [resolvable:$true] %s2043_s18 }
 0x21b   :  { %v3289_v17 = vmul.f32 %v3227_v38, %v4026_v35  ;;  %v3295_v21 = vmul.f32 %v3227_v38, %v4027_v43  ;;  %v4028_v49 = vsub.f32 %v2831_v7, %v3095_v3  ;;  %v4031_v35 = vsub.f32 %v2852_v33, %v3095_v3  ;;  %s2655_s19 = scalar_lea.vmem %s2044_s18, 4096  ;;  %p2660_p3 = scmp.lt.s32.totalorder %s2044_s18, %s2044_s18 }
 0x21c   :  { %v3263_v19 = vmul.f32 %v3227_v38, %v4021_v16  ;;  %v3281_v29 = vmul.f32 %v3227_v38, %v4025_v37  ;;  %v1581_v16 = vmul.f32 %v3232_v61, %v1510_v62  ;;  %v4029_v62 = vsub.f32 %v2838_v13, %v3095_v3  ;;  %p2656_p2 = scmp.ne.s32.totalorder %s2044_s18, %s2655_s19  ;;  %p2661_p4 = scmp.lt.s32.totalorder %s2655_s19, %s2655_s19 }
 0x21d   :  { %v3301_v37 = vmul.f32 %v3227_v38, %v4028_v49  ;;  %v3319_v7 = vmul.f32 %v3227_v38, %v4031_v35  ;;  %v4032_v13 = vsub.f32 %v2859_v45, %v3095_v3  ;;  %v4034_v33 = vsub.f32 %v2873_v1, %v3095_v3 }
 0x21e   :  { %4022 = vst [vmem:[#allocation14_spill] sm:$0xff] %v3263_v19  ;;  %v1582_v19 = vmul.f32 %v3232_v61, %v1511_v32  ;;  %v3307_v57 = vmul.f32 %v3227_v38, %v4029_v62  ;;  %v4030_v32 = vsub.f32 %v2845_v25, %v3095_v3  ;;  %v1652_v43 = vadd.f32 %v3257_v52, %v1581_v16  ;;  %p2662_p5 = por %p2661_p4, %p2660_p3 }
 0x21f   :  { %v3327_v62 = vmul.f32 %v3227_v38, %v4032_v13  ;;  %v4033_v25 = vsub.f32 %v2866_v53, %v3095_v3  ;;  %v3339_v35 = vmul.f32 %v3227_v38, %v4034_v33  ;;  %v4036_v16 = vsub.f32 %v2887_v23, %v3095_v3 }
 0x220   :  { %v3313_v63 = vmul.f32 %v3227_v38, %v4030_v32  ;;  %v1653_v49 = vadd.f32 %v3257_v52, %v1582_v19  ;;  %v4035_v19 = vsub.f32 %v2880_v9, %v3095_v3  ;;  %v4037_v13 = vsub.f32 %v3996_v4, %v3095_v3  ;;  %p2663_p6 = pnand %p2662_p5, %p2656_p2 }
 0x221   :  { %v3333_v32 = vmul.f32 %v3227_v38, %v4033_v25  ;;  %v3351_v53 = vmul.f32 %v3227_v38, %v4036_v16  ;;  %v1716_v25 = vmax.f32 %v1652_v43, 0.0  ;;  %v4038_v9 = vsub.f32 %v3997_v60, %v3095_v3  ;;  %v4043_v43 = vld [vmem:[#allocation20_spill] sm:$0xff] }
 0x222   :  { %v3345_v45 = vmul.f32 %v3227_v38, %v4035_v19  ;;  %v3357_v1 = vmul.f32 %v3227_v38, %v4037_v13  ;;  %v1717_v33 = vmax.f32 %v1653_v49, 0.0  ;;  %v4039_v23 = vsub.f32 %v3998_v55, %v3095_v3 }
 0x223   :  { %v3363_v19 = vmul.f32 %v3227_v38, %v4038_v9  ;;  %v4041_v4 = vsub.f32 %v3999_v27, %v3095_v3  ;;  %v4044_v49 = vsub.f32 %v4043_v43, %v3095_v3  ;;  %v4045_v9 = vld [vmem:[#allocation22_spill] sm:$0xff] }
 0x224   :  { %v3369_v16 = vmul.f32 %v3227_v38, %v4039_v23  ;;  %v4046_v52 = vsub.f32 %v4045_v9, %v3095_v3  ;;  %v4047_v23 = vld [vmem:[#allocation24_spill] sm:$0xff] }
 0x225   :  { %v3375_v13 = vmul.f32 %v3227_v38, %v4041_v4  ;;  %v3381_v60 = vmul.f32 %v3227_v38, %v4044_v49  ;;  %v2424_v4 = vpack.c.bf16 %v1717_v33, %v1716_v25  ;;  %v4051_v49 = vsub.f32 %v4004_v5, %v3095_v3 }
 0x226   :  { %4040 = vst [vmem:[#allocation16_spill] sm:$0xff] %v3369_v16  ;;  %v3387_v55 = vmul.f32 %v3227_v38, %v4046_v52  ;;  %v4048_v16 = vsub.f32 %v4047_v23, %v3095_v3  ;;  %v4053_v52 = vsub.f32 %v4005_v31, %v3095_v3  ;;  %v4055_v25 = vsub.f32 %v4006_v47, %v3095_v3 }
 0x227   :  { %4042 = vst [vmem:[#allocation18_spill] sm:$0xff] %v3375_v13  ;;  %v4049_v13 = vsub.f32 %v4003_v20, %v3095_v3  ;;  %v3405_v9 = vmul.f32 %v3227_v38, %v4051_v49  ;;  %v4057_v33 = vsub.f32 %v4007_v12, %v3095_v3  ;;  %2456 = vst [vmem:[#allocation8 + $0xf8] sm:$0xff] %v2424_v4  }
 0x228   :  { %v3393_v27 = vmul.f32 %v3227_v38, %v4048_v16  ;;  %v3411_v23 = vmul.f32 %v3227_v38, %v4053_v52  ;;  %v3417_v20 = vmul.f32 %v3227_v38, %v4055_v25  ;;  %v4059_v16 = vsub.f32 %v4008_v59, %v3095_v3 }
 0x229   :  { %v3399_v43 = vmul.f32 %v3227_v38, %v4049_v13  ;;  %4052 = vst [vmem:[#allocation26_spill] sm:$0xff] %v3405_v9  ;;  %v3423_v5 = vmul.f32 %v3227_v38, %v4057_v33  ;;  %v4061_v13 = vsub.f32 %v4009_v41, %v3095_v3  ;;  %v4063_v49 = vsub.f32 %v4010_v28, %v3095_v3  ;;  %v4100_v9 = vld [vmem:[#allocation35_spill] sm:$0xff] }
 0x22a   :  { %4054 = vst [vmem:[#allocation28_spill] sm:$0xff] %v3411_v23  ;;  %4056 = vst [vmem:[#allocation30_spill] sm:$0xff] %v3417_v20  ;;  %v3429_v31 = vmul.f32 %v3227_v38, %v4059_v16  ;;  %v4064_v52 = vsub.f32 %v2777_v18, %v3095_v3  ;;  %v4065_v25 = vsub.f32 %v2781_v22, %v3095_v3  ;;  %v4091_v20 = vld [vmem:[#allocation23_spill] sm:$0xff]  ;;  %v4098_v23 = vld [vmem:[#allocation33_spill] sm:$0xff] }
 0x22b   :  { %4050 = vst [vmem:[#allocation25_spill] sm:$0xff] %v3399_v43  ;;  %4058 = vst [vmem:[#allocation32_spill] sm:$0xff] %v3423_v5  ;;  %v3435_v47 = vmul.f32 %v3227_v38, %v4061_v13  ;;  %v1479_v12 = vmul.f32 %v3227_v38, %v4063_v49  ;;  %v4066_v41 = vsub.f32 %v2791_v30, %v3095_v3  ;;  %v4089_v5 = vld [vmem:[#allocation21_spill] sm:$0xff]  ;;  %v4102_v43 = vld [vmem:[#allocation14_spill] sm:$0xff] }
 0x22c   :  { %4060 = vst [vmem:[#allocation34_spill] sm:$0xff] %v3429_v31  ;;  %v1480_v59 = vmul.f32 %v3227_v38, %v4064_v52  ;;  %v1481_v33 = vmul.f32 %v3227_v38, %v4065_v25  ;;  %v4067_v28 = vsub.f32 %v2798_v36, %v3095_v3  ;;  %v4068_v18 = vsub.f32 %v2805_v44, %v3095_v3  ;;  %v4087_v31 = vld [vmem:[#allocation19_spill] sm:$0xff] }
 0x22d   :  { %4062 = vst [vmem:[#allocation36_spill] sm:$0xff] %v3435_v47  ;;  %v1482_v4 = vmul.f32 %v3227_v38, %v4066_v41  ;;  %v4069_v22 = vsub.f32 %v2812_v50, %v3095_v3  ;;  %v4070_v30 = vsub.f32 %v2819_v58, %v3095_v3  ;;  %v4071_v36 = vsub.f32 %v2826_v0, %v3095_v3  ;;  %v4085_v47 = vld [vmem:[#allocation17_spill] sm:$0xff] }
 0x22e   :  { %v1483_v16 = vmul.f32 %v3227_v38, %v4067_v28  ;;  %v1484_v13 = vmul.f32 %v3227_v38, %v4068_v18  ;;  %v4072_v44 = vsub.f32 %v2833_v8, %v3095_v3  ;;  %v4073_v50 = vsub.f32 %v2840_v14, %v3095_v3 }
 0x22f   :  { %v1485_v49 = vmul.f32 %v3227_v38, %v4069_v22  ;;  %v1486_v52 = vmul.f32 %v3227_v38, %v4070_v30  ;;  %v1487_v25 = vmul.f32 %v3227_v38, %v4071_v36  ;;  %v4074_v58 = vsub.f32 %v2847_v26, %v3095_v3 }
 0x230   :  { %v1488_v41 = vmul.f32 %v3227_v38, %v4072_v44  ;;  %v1489_v28 = vmul.f32 %v3227_v38, %v4073_v50  ;;  %v4075_v0 = vsub.f32 %v2854_v34, %v3095_v3  ;;  %v4076_v8 = vsub.f32 %v2861_v46, %v3095_v3 }
 0x231   :  { %v1490_v18 = vmul.f32 %v3227_v38, %v4074_v58  ;;  %v4077_v14 = vsub.f32 %v2868_v54, %v3095_v3  ;;  %v4078_v26 = vsub.f32 %v2875_v2, %v3095_v3  ;;  %v4079_v34 = vsub.f32 %v2882_v10, %v3095_v3 }
 0x232   :  { %v1491_v22 = vmul.f32 %v3227_v38, %v4075_v0  ;;  %v1492_v30 = vmul.f32 %v3227_v38, %v4076_v8  ;;  %v4080_v46 = vsub.f32 %v2889_v24, %v3095_v3  ;;  %v4081_v0 = vld [vmem:[#allocation13_spill] sm:$0xff]  ;;  %v4086_v10 = vsub.f32 %v4085_v47, %v3095_v3 }
 0x233   :  { %v1493_v36 = vmul.f32 %v3227_v38, %v4077_v14  ;;  %v1494_v44 = vmul.f32 %v3227_v38, %v4078_v26  ;;  %v1495_v50 = vmul.f32 %v3227_v38, %v4079_v34  ;;  %v4082_v54 = vsub.f32 %v4081_v0, %v3095_v3  ;;  %v4083_v14 = vld [vmem:[#allocation15_spill] sm:$0xff] }
 0x234   :  { %v1496_v58 = vmul.f32 %v3227_v38, %v4080_v46  ;;  %v4084_v2 = vsub.f32 %v4083_v14, %v3095_v3  ;;  %v1499_v34 = vmul.f32 %v3227_v38, %v4086_v10  ;;  %v4088_v24 = vsub.f32 %v4087_v31, %v3095_v3 }
 0x235   :  { %v1497_v8 = vmul.f32 %v3227_v38, %v4082_v54  ;;  %v4090_v0 = vsub.f32 %v4089_v5, %v3095_v3  ;;  %v4092_v14 = vsub.f32 %v4091_v20, %v3095_v3  ;;  %v4093_v47 = vsub.f32 %v2938_v6, %v3095_v3 }
 0x236   :  { %v1498_v26 = vmul.f32 %v3227_v38, %v4084_v2  ;;  %v1500_v46 = vmul.f32 %v3227_v38, %v4088_v24  ;;  %v4094_v31 = vsub.f32 %v2945_v40, %v3095_v3  ;;  %v4095_v5 = vsub.f32 %v4011_v15, %v3095_v3 }
 0x237   :  { %v1501_v54 = vmul.f32 %v3227_v38, %v4090_v0  ;;  %v1502_v2 = vmul.f32 %v3227_v38, %v4092_v14  ;;  %v1503_v10 = vmul.f32 %v3227_v38, %v4093_v47  ;;  %v4096_v20 = vsub.f32 %v4012_v42, %v3095_v3 }
 0x238   :  { %v1504_v24 = vmul.f32 %v3227_v38, %v4094_v31  ;;  %v1505_v0 = vmul.f32 %v3227_v38, %v4095_v5  ;;  %v4097_v6 = vsub.f32 %v4013_v48, %v3095_v3  ;;  %v4099_v40 = vsub.f32 %v4098_v23, %v3095_v3 }
 0x239   :  { %v1506_v14 = vmul.f32 %v3227_v38, %v4096_v20  ;;  %v4101_v15 = vsub.f32 %v4100_v9, %v3095_v3  ;;  %v1519_v42 = vmul.f32 %v3232_v61, %v3246_v11  ;;  %v1520_v20 = vmul.f32 %v3232_v61, %v3252_v51  ;;  %v4103_v9 = vld [vmem:[#allocation16_spill] sm:$0xff] }
 0x23a   :  { %v1507_v47 = vmul.f32 %v3227_v38, %v4097_v6  ;;  %v1508_v31 = vmul.f32 %v3227_v38, %v4099_v40  ;;  %v1521_v48 = vmul.f32 %v3232_v61, %v4102_v43  ;;  %v1522_v6 = vmul.f32 %v3232_v61, %v3269_v56  ;;  %v4104_v40 = vld [vmem:[#allocation18_spill] sm:$0xff] }
 0x23b   :  { %v1509_v5 = vmul.f32 %v3227_v38, %v4101_v15  ;;  %v1523_v23 = vmul.f32 %v3232_v61, %v3275_v39  ;;  %v1524_v3 = vmul.f32 %v3232_v61, %v3281_v29  ;;  %v1525_v38 = vmul.f32 %v3232_v61, %v3289_v17  ;;  %v4105_v15 = vld [vmem:[#allocation25_spill] sm:$0xff] }
 0x23c   :  { %v1526_v11 = vmul.f32 %v3232_v61, %v3295_v21  ;;  %v1527_v51 = vmul.f32 %v3232_v61, %v3301_v37  ;;  %v1528_v43 = vmul.f32 %v3232_v61, %v3307_v57  ;;  %v1529_v56 = vmul.f32 %v3232_v61, %v3313_v63 }
 0x23d   :  { %v1530_v39 = vmul.f32 %v3232_v61, %v3319_v7  ;;  %v1531_v29 = vmul.f32 %v3232_v61, %v3327_v62  ;;  %v1532_v17 = vmul.f32 %v3232_v61, %v3333_v32  ;;  %v1533_v21 = vmul.f32 %v3232_v61, %v3339_v35 }
 0x23e   :  { %v1534_v37 = vmul.f32 %v3232_v61, %v3345_v45  ;;  %v1535_v57 = vmul.f32 %v3232_v61, %v3351_v53  ;;  %v1536_v63 = vmul.f32 %v3232_v61, %v3357_v1  ;;  %v1537_v7 = vmul.f32 %v3232_v61, %v3363_v19  ;;  %v4106_v19 = vld [vmem:[#allocation26_spill] sm:$0xff] }
 0x23f   :  { %v1538_v62 = vmul.f32 %v3232_v61, %v4103_v9  ;;  %v1539_v32 = vmul.f32 %v3232_v61, %v4104_v40  ;;  %v1540_v35 = vmul.f32 %v3232_v61, %v3381_v60  ;;  %v1541_v45 = vmul.f32 %v3232_v61, %v3387_v55  ;;  %v4107_v40 = vld [vmem:[#allocation28_spill] sm:$0xff]  ;;  %v4108_v55 = vld [vmem:[#allocation30_spill] sm:$0xff] }
 0x240   :  { %v1542_v53 = vmul.f32 %v3232_v61, %v3393_v27  ;;  %v1543_v1 = vmul.f32 %v3232_v61, %v4105_v15  ;;  %v1544_v9 = vmul.f32 %v3232_v61, %v4106_v19  ;;  %v1545_v60 = vmul.f32 %v3232_v61, %v4107_v40  ;;  %v4109_v15 = vld [vmem:[#allocation32_spill] sm:$0xff]  ;;  %v4110_v40 = vld [vmem:[#allocation34_spill] sm:$0xff] }
 0x241   :  { %v1546_v27 = vmul.f32 %v3232_v61, %v4108_v55  ;;  %v1547_v19 = vmul.f32 %v3232_v61, %v4109_v15  ;;  %v1548_v55 = vmul.f32 %v3232_v61, %v4110_v40  ;;  %v4111_v15 = vld [vmem:[#allocation36_spill] sm:$0xff] }
 0x242   :  { %v1549_v40 = vmul.f32 %v3232_v61, %v4111_v15  ;;  %v1550_v15 = vmul.f32 %v3232_v61, %v1479_v12  ;;  %v1551_v12 = vmul.f32 %v3232_v61, %v1480_v59  ;;  %v1552_v59 = vmul.f32 %v3232_v61, %v1481_v33 }
 0x243   :  { %v1553_v33 = vmul.f32 %v3232_v61, %v1482_v4  ;;  %v1554_v4 = vmul.f32 %v3232_v61, %v1483_v16  ;;  %v1555_v16 = vmul.f32 %v3232_v61, %v1484_v13  ;;  %v1556_v13 = vmul.f32 %v3232_v61, %v1485_v49 }
 0x244   :  { %v1557_v49 = vmul.f32 %v3232_v61, %v1486_v52  ;;  %v1558_v52 = vmul.f32 %v3232_v61, %v1487_v25  ;;  %v1559_v25 = vmul.f32 %v3232_v61, %v1488_v41  ;;  %v1560_v41 = vmul.f32 %v3232_v61, %v1489_v28 }
 0x245   :  { %v1561_v28 = vmul.f32 %v3232_v61, %v1490_v18  ;;  %v1562_v18 = vmul.f32 %v3232_v61, %v1491_v22  ;;  %v1563_v22 = vmul.f32 %v3232_v61, %v1492_v30  ;;  %v1564_v30 = vmul.f32 %v3232_v61, %v1493_v36 }
 0x246   :  { %v1565_v36 = vmul.f32 %v3232_v61, %v1494_v44  ;;  %v1566_v44 = vmul.f32 %v3232_v61, %v1495_v50  ;;  %v1567_v50 = vmul.f32 %v3232_v61, %v1496_v58  ;;  %v1568_v58 = vmul.f32 %v3232_v61, %v1497_v8 }
 0x247   :  { %v1569_v8 = vmul.f32 %v3232_v61, %v1498_v26  ;;  %v1570_v26 = vmul.f32 %v3232_v61, %v1499_v34  ;;  %v1571_v34 = vmul.f32 %v3232_v61, %v1500_v46  ;;  %v1572_v46 = vmul.f32 %v3232_v61, %v1501_v54 }
 0x248   :  { %v1573_v54 = vmul.f32 %v3232_v61, %v1502_v2  ;;  %v1574_v2 = vmul.f32 %v3232_v61, %v1503_v10  ;;  %v1575_v10 = vmul.f32 %v3232_v61, %v1504_v24  ;;  %v1576_v24 = vmul.f32 %v3232_v61, %v1505_v0 }
 0x249   :  { %v1577_v0 = vmul.f32 %v3232_v61, %v1506_v14  ;;  %v1578_v14 = vmul.f32 %v3232_v61, %v1507_v47  ;;  %v1579_v47 = vmul.f32 %v3232_v61, %v1508_v31  ;;  %v1580_v31 = vmul.f32 %v3232_v61, %v1509_v5  ;;  %v4112_v5 = vld [vmem:[#allocation12_spill] sm:$0xff] }
 0x24a   :  { %v3655_v61 = vadd.f32 %v4112_v5, %v1519_v42  ;;  %v3658_v42 = vadd.f32 %v4112_v5, %v1520_v20  ;;  %v3664_v20 = vadd.f32 %v4112_v5, %v1522_v6  ;;  %v3676_v6 = vadd.f32 %v4112_v5, %v1526_v11 }
 0x24b   :  { %v3697_v11 = vadd.f32 %v4112_v5, %v1533_v21  ;;  %v3718_v21 = vadd.f32 %v4112_v5, %v1540_v35  ;;  %v3739_v35 = vadd.f32 %v4112_v5, %v1547_v19  ;;  %v3760_v19 = vadd.f32 %v4112_v5, %v1554_v4 }
 0x24c   :  { %4113 = vst [vmem:[#allocation37_spill] sm:$0xff] %v3655_v61  ;;  %4114 = vst [vmem:[#allocation27_spill] sm:$0xff] %v3658_v42  ;;  %v3661_v61 = vadd.f32 %v4112_v5, %v1521_v48  ;;  %v3667_v42 = vadd.f32 %v4112_v5, %v1523_v23  ;;  %v3670_v48 = vadd.f32 %v4112_v5, %v1524_v3 }
 0x24d   :  { %4116 = vst [vmem:[#allocation31_spill] sm:$0xff] %v3664_v20  ;;  %v3679_v20 = vadd.f32 %v4112_v5, %v1527_v51  ;;  %v3682_v23 = vadd.f32 %v4112_v5, %v1528_v43  ;;  %v3688_v3 = vadd.f32 %v4112_v5, %v1530_v39  ;;  %v3700_v51 = vadd.f32 %v4112_v5, %v1534_v37 }
 0x24e   :  { %4115 = vst [vmem:[#allocation29_spill] sm:$0xff] %v3661_v61  ;;  %4117 = vst [vmem:[#allocation20_spill] sm:$0xff] %v3667_v42  ;;  %v3673_v61 = vadd.f32 %v4112_v5, %v1525_v38  ;;  %v3685_v42 = vadd.f32 %v4112_v5, %v1529_v56  ;;  %v3694_v38 = vadd.f32 %v4112_v5, %v1532_v17 }
 0x24f   :  { %4118 = vst [vmem:[#allocation22_spill] sm:$0xff] %v3670_v48  ;;  %v3691_v48 = vadd.f32 %v4112_v5, %v1531_v29  ;;  %v3703_v43 = vadd.f32 %v4112_v5, %v1535_v57  ;;  %v3706_v56 = vadd.f32 %v4112_v5, %v1536_v63  ;;  %v3709_v39 = vadd.f32 %v4112_v5, %v1537_v7 }
 0x250   :  { %v3712_v29 = vadd.f32 %v4112_v5, %v1538_v62  ;;  %v3715_v17 = vadd.f32 %v4112_v5, %v1539_v32  ;;  %v3721_v37 = vadd.f32 %v4112_v5, %v1541_v45  ;;  %v3724_v57 = vadd.f32 %v4112_v5, %v1542_v53 }
 0x251   :  { %v3727_v63 = vadd.f32 %v4112_v5, %v1543_v1  ;;  %v3730_v7 = vadd.f32 %v4112_v5, %v1544_v9  ;;  %v3733_v62 = vadd.f32 %v4112_v5, %v1545_v60  ;;  %v3736_v32 = vadd.f32 %v4112_v5, %v1546_v27 }
 0x252   :  { %v3742_v45 = vadd.f32 %v4112_v5, %v1548_v55  ;;  %v3745_v53 = vadd.f32 %v4112_v5, %v1549_v40  ;;  %v3748_v1 = vadd.f32 %v4112_v5, %v1550_v15  ;;  %v3751_v9 = vadd.f32 %v4112_v5, %v1551_v12 }
 0x253   :  { %v3754_v60 = vadd.f32 %v4112_v5, %v1552_v59  ;;  %v3757_v27 = vadd.f32 %v4112_v5, %v1553_v33  ;;  %v3763_v55 = vadd.f32 %v4112_v5, %v1555_v16  ;;  %v3766_v40 = vadd.f32 %v4112_v5, %v1556_v13 }
 0x254   :  { %v3769_v15 = vadd.f32 %v4112_v5, %v1557_v49  ;;  %v3772_v12 = vadd.f32 %v4112_v5, %v1558_v52  ;;  %v3775_v59 = vadd.f32 %v4112_v5, %v1559_v25  ;;  %v3778_v33 = vadd.f32 %v4112_v5, %v1560_v41 }
 0x255   :  { %v3781_v4 = vadd.f32 %v4112_v5, %v1561_v28  ;;  %v3784_v16 = vadd.f32 %v4112_v5, %v1562_v18  ;;  %v3787_v13 = vadd.f32 %v4112_v5, %v1563_v22  ;;  %v3790_v49 = vadd.f32 %v4112_v5, %v1564_v30 }
 0x256   :  { %v3793_v52 = vadd.f32 %v4112_v5, %v1565_v36  ;;  %v3796_v25 = vadd.f32 %v4112_v5, %v1566_v44  ;;  %v3799_v41 = vadd.f32 %v4112_v5, %v1567_v50  ;;  %v3802_v28 = vadd.f32 %v4112_v5, %v1568_v58 }
 0x257   :  { %v3805_v18 = vadd.f32 %v4112_v5, %v1569_v8  ;;  %v3808_v22 = vadd.f32 %v4112_v5, %v1570_v26  ;;  %v3811_v30 = vadd.f32 %v4112_v5, %v1571_v34  ;;  %v3814_v36 = vadd.f32 %v4112_v5, %v1572_v46 }
 0x258   :  { %v3817_v44 = vadd.f32 %v4112_v5, %v1573_v54  ;;  %v3820_v50 = vadd.f32 %v4112_v5, %v1574_v2  ;;  %v3823_v58 = vadd.f32 %v4112_v5, %v1575_v10  ;;  %v3826_v8 = vadd.f32 %v4112_v5, %v1576_v24  ;;  %v4130_v2 = vld [vmem:[#allocation37_spill] sm:$0xff]  ;;  %v4133_v24 = vld [vmem:[#allocation31_spill] sm:$0xff] }
 0x259   :  { %4119 = vst [vmem:[#allocation24_spill] sm:$0xff] %v3808_v22  ;;  %4120 = vst [vmem:[#allocation13_spill] sm:$0xff] %v3811_v30  ;;  %v3829_v26 = vadd.f32 %v4112_v5, %v1577_v0  ;;  %v3832_v34 = vadd.f32 %v4112_v5, %v1578_v14  ;;  %v3835_v46 = vadd.f32 %v4112_v5, %v1579_v47  ;;  %v4134_v30 = vld [vmem:[#allocation20_spill] sm:$0xff]  ;;  %v1660_v14 = vmax.f32 %v3673_v61, 0.0 }
 0x25a   :  { %4121 = vst [vmem:[#allocation15_spill] sm:$0xff] %v3814_v36  ;;  %4122 = vst [vmem:[#allocation17_spill] sm:$0xff] %v3817_v44  ;;  %v3838_v54 = vadd.f32 %v4112_v5, %v1580_v31  ;;  %v4131_v44 = vld [vmem:[#allocation27_spill] sm:$0xff]  ;;  %v1658_v0 = vmax.f32 %v4134_v30, 0.0  ;;  %v1661_v47 = vmax.f32 %v3676_v6, 0.0  ;;  %v1663_v31 = vmax.f32 %v3682_v23, 0.0 }
 0x25b   :  { %4123 = vst [vmem:[#allocation19_spill] sm:$0xff] %v3820_v50  ;;  %4124 = vst [vmem:[#allocation21_spill] sm:$0xff] %v3823_v58  ;;  %v1654_v50 = vmax.f32 %v4130_v2, 0.0  ;;  %v1655_v10 = vmax.f32 %v4131_v44, 0.0  ;;  %v4132_v58 = vld [vmem:[#allocation29_spill] sm:$0xff]  ;;  %v1664_v5 = vmax.f32 %v3685_v42, 0.0 }
 0x25c   :  { %4125 = vst [vmem:[#allocation23_spill] sm:$0xff] %v3826_v8  ;;  %4126 = vst [vmem:[#allocation33_spill] sm:$0xff] %v3829_v26  ;;  %v1656_v36 = vmax.f32 %v4132_v58, 0.0  ;;  %v1657_v8 = vmax.f32 %v4133_v24, 0.0  ;;  %v4135_v26 = vld [vmem:[#allocation22_spill] sm:$0xff]  ;;  %v1665_v44 = vmax.f32 %v3688_v3, 0.0 }
 0x25d   :  { %4127 = vst [vmem:[#allocation35_spill] sm:$0xff] %v3832_v34  ;;  %4128 = vst [vmem:[#allocation14_spill] sm:$0xff] %v3835_v46  ;;  %v1659_v22 = vmax.f32 %v4135_v26, 0.0  ;;  %v1662_v46 = vmax.f32 %v3679_v20, 0.0  ;;  %v1666_v58 = vmax.f32 %v3691_v48, 0.0  ;;  %v1667_v2 = vmax.f32 %v3694_v38, 0.0 }
 0x25e   :  { %4129 = vst [vmem:[#allocation16_spill] sm:$0xff] %v3838_v54  ;;  %v1668_v30 = vmax.f32 %v3697_v11, 0.0  ;;  %v1669_v26 = vmax.f32 %v3700_v51, 0.0  ;;  %v1670_v61 = vmax.f32 %v3703_v43, 0.0  ;;  %v1671_v6 = vmax.f32 %v3706_v56, 0.0 }
 0x25f   :  { %v1672_v20 = vmax.f32 %v3709_v39, 0.0  ;;  %v1673_v23 = vmax.f32 %v3712_v29, 0.0  ;;  %v1674_v42 = vmax.f32 %v3715_v17, 0.0  ;;  %v1675_v3 = vmax.f32 %v3718_v21, 0.0 }
 0x260   :  { %v1676_v48 = vmax.f32 %v3721_v37, 0.0  ;;  %v1677_v38 = vmax.f32 %v3724_v57, 0.0  ;;  %v1678_v11 = vmax.f32 %v3727_v63, 0.0  ;;  %v1679_v51 = vmax.f32 %v3730_v7, 0.0  ;;  %v4136_v24 = vld [vmem:[#allocation24_spill] sm:$0xff]  ;;  %v4137_v54 = vld [vmem:[#allocation13_spill] sm:$0xff] }
 0x261   :  { %v1680_v43 = vmax.f32 %v3733_v62, 0.0  ;;  %v1681_v56 = vmax.f32 %v3736_v32, 0.0  ;;  %v1682_v39 = vmax.f32 %v3739_v35, 0.0  ;;  %v1683_v29 = vmax.f32 %v3742_v45, 0.0  ;;  %v4138_v34 = vld [vmem:[#allocation15_spill] sm:$0xff] }
 0x262   :  { %v1684_v17 = vmax.f32 %v3745_v53, 0.0  ;;  %v1685_v21 = vmax.f32 %v3748_v1, 0.0  ;;  %v1686_v37 = vmax.f32 %v3751_v9, 0.0  ;;  %v1687_v57 = vmax.f32 %v3754_v60, 0.0 }
 0x263   :  { %v1688_v63 = vmax.f32 %v3757_v27, 0.0  ;;  %v1689_v7 = vmax.f32 %v3760_v19, 0.0  ;;  %v1690_v62 = vmax.f32 %v3763_v55, 0.0  ;;  %v1691_v32 = vmax.f32 %v3766_v40, 0.0 }
 0x264   :  { %v1692_v35 = vmax.f32 %v3769_v15, 0.0  ;;  %v1693_v45 = vmax.f32 %v3772_v12, 0.0  ;;  %v1694_v53 = vmax.f32 %v3775_v59, 0.0  ;;  %v1695_v1 = vmax.f32 %v3778_v33, 0.0 }
 0x265   :  { %v1696_v9 = vmax.f32 %v3781_v4, 0.0  ;;  %v1697_v60 = vmax.f32 %v3784_v16, 0.0  ;;  %v1698_v27 = vmax.f32 %v3787_v13, 0.0  ;;  %v1699_v19 = vmax.f32 %v3790_v49, 0.0  ;;  %v4139_v13 = vld [vmem:[#allocation17_spill] sm:$0xff] }
 0x266   :  { %v1700_v55 = vmax.f32 %v3793_v52, 0.0  ;;  %v1701_v40 = vmax.f32 %v3796_v25, 0.0  ;;  %v1702_v15 = vmax.f32 %v3799_v41, 0.0  ;;  %v1703_v12 = vmax.f32 %v3802_v28, 0.0  ;;  %v4140_v52 = vld [vmem:[#allocation19_spill] sm:$0xff]  ;;  %v4141_v41 = vld [vmem:[#allocation21_spill] sm:$0xff] }
 0x267   :  { %v1704_v59 = vmax.f32 %v3805_v18, 0.0  ;;  %v1705_v33 = vmax.f32 %v4136_v24, 0.0  ;;  %v1706_v4 = vmax.f32 %v4137_v54, 0.0  ;;  %v1707_v16 = vmax.f32 %v4138_v34, 0.0  ;;  %v4142_v18 = vld [vmem:[#allocation23_spill] sm:$0xff]  ;;  %v4143_v54 = vld [vmem:[#allocation33_spill] sm:$0xff] }
 0x268   :  { %v1708_v49 = vmax.f32 %v4139_v13, 0.0  ;;  %v1709_v25 = vmax.f32 %v4140_v52, 0.0  ;;  %v1710_v28 = vmax.f32 %v4141_v41, 0.0  ;;  %v1711_v24 = vmax.f32 %v4142_v18, 0.0  ;;  %v4144_v13 = vld [vmem:[#allocation35_spill] sm:$0xff]  ;;  %v4145_v41 = vld [vmem:[#allocation14_spill] sm:$0xff] }
 0x269   :  { %v1712_v34 = vmax.f32 %v4143_v54, 0.0  ;;  %v1713_v52 = vmax.f32 %v4144_v13, 0.0  ;;  %v1714_v18 = vmax.f32 %v4145_v41, 0.0  ;;  %v4146_v54 = vld [vmem:[#allocation16_spill] sm:$0xff]  ;;  %v2269_v41 = vpack.c.bf16 %v1655_v10, %v1654_v50 }
 0x26a   :  { %v1715_v13 = vmax.f32 %v4146_v54, 0.0  ;;  %v2274_v54 = vpack.c.bf16 %v1657_v8, %v1656_v36  ;;  %v2279_v10 = vpack.c.bf16 %v1659_v22, %v1658_v0  ;;  %v2284_v50 = vpack.c.bf16 %v1661_v47, %v1660_v14 }
 0x26b   :  { %v2289_v8 = vpack.c.bf16 %v1663_v31, %v1662_v46  ;;  %v2294_v36 = vpack.c.bf16 %v1665_v44, %v1664_v5  ;;  %v2299_v0 = vpack.c.bf16 %v1667_v2, %v1666_v58  ;;  %2270 = vst [vmem:[#allocation8] sm:$0xff] %v2269_v41   ;;  %v2304_v22 = vpack.c.bf16 %v1669_v26, %v1668_v30 }
 0x26c   :  { %2426 = vst [vmem:[#allocation8 + $0x8] sm:$0xff] %v2274_v54   ;;  %2427 = vst [vmem:[#allocation8 + $0x10] sm:$0xff] %v2279_v10   ;;  %v2309_v14 = vpack.c.bf16 %v1671_v6, %v1670_v61  ;;  %v2314_v47 = vpack.c.bf16 %v1673_v23, %v1672_v20  ;;  %v2319_v31 = vpack.c.bf16 %v1675_v3, %v1674_v42 }
 0x26d   :  { %2428 = vst [vmem:[#allocation8 + $0x18] sm:$0xff] %v2284_v50   ;;  %2429 = vst [vmem:[#allocation8 + $0x20] sm:$0xff] %v2289_v8   ;;  %v2324_v46 = vpack.c.bf16 %v1677_v38, %v1676_v48  ;;  %v2329_v5 = vpack.c.bf16 %v1679_v51, %v1678_v11  ;;  %v2334_v44 = vpack.c.bf16 %v1681_v56, %v1680_v43 }
 0x26e   :  { %2430 = vst [vmem:[#allocation8 + $0x28] sm:$0xff] %v2294_v36   ;;  %2431 = vst [vmem:[#allocation8 + $0x30] sm:$0xff] %v2299_v0   ;;  %v2339_v2 = vpack.c.bf16 %v1683_v29, %v1682_v39  ;;  %v2344_v58 = vpack.c.bf16 %v1685_v21, %v1684_v17  ;;  %v2349_v41 = vpack.c.bf16 %v1687_v57, %v1686_v37 }
 0x26f   :  { %2432 = vst [vmem:[#allocation8 + $0x38] sm:$0xff] %v2304_v22   ;;  %2433 = vst [vmem:[#allocation8 + $0x40] sm:$0xff] %v2309_v14   ;;  %v2354_v54 = vpack.c.bf16 %v1689_v7, %v1688_v63  ;;  %v2359_v10 = vpack.c.bf16 %v1691_v32, %v1690_v62  ;;  %v2364_v30 = vpack.c.bf16 %v1693_v45, %v1692_v35 }
 0x270   :  { %2434 = vst [vmem:[#allocation8 + $0x48] sm:$0xff] %v2314_v47   ;;  %2435 = vst [vmem:[#allocation8 + $0x50] sm:$0xff] %v2319_v31   ;;  %v2369_v26 = vpack.c.bf16 %v1695_v1, %v1694_v53  ;;  %v2374_v61 = vpack.c.bf16 %v1697_v60, %v1696_v9  ;;  %v2379_v6 = vpack.c.bf16 %v1699_v19, %v1698_v27 }
 0x271   :  { %2436 = vst [vmem:[#allocation8 + $0x58] sm:$0xff] %v2324_v46   ;;  %2437 = vst [vmem:[#allocation8 + $0x60] sm:$0xff] %v2329_v5   ;;  %v2384_v20 = vpack.c.bf16 %v1701_v40, %v1700_v55  ;;  %v2389_v23 = vpack.c.bf16 %v1703_v12, %v1702_v15  ;;  %v2394_v42 = vpack.c.bf16 %v1705_v33, %v1704_v59 }
 0x272   :  { %2438 = vst [vmem:[#allocation8 + $0x68] sm:$0xff] %v2334_v44   ;;  %2439 = vst [vmem:[#allocation8 + $0x70] sm:$0xff] %v2339_v2   ;;  %v2399_v3 = vpack.c.bf16 %v1707_v16, %v1706_v4  ;;  %v2404_v48 = vpack.c.bf16 %v1709_v25, %v1708_v49  ;;  %v2409_v38 = vpack.c.bf16 %v1711_v24, %v1710_v28 }
 0x273   :  { %2440 = vst [vmem:[#allocation8 + $0x78] sm:$0xff] %v2344_v58   ;;  %2441 = vst [vmem:[#allocation8 + $0x80] sm:$0xff] %v2349_v41   ;;  %v2414_v11 = vpack.c.bf16 %v1713_v52, %v1712_v34  ;;  %v2419_v51 = vpack.c.bf16 %v1715_v13, %v1714_v18 }
 0x274   :  { %2442 = vst [vmem:[#allocation8 + $0x88] sm:$0xff] %v2354_v54   ;;  %2443 = vst [vmem:[#allocation8 + $0x90] sm:$0xff] %v2359_v10  }
 0x275   :  { %2444 = vst [vmem:[#allocation8 + $0x98] sm:$0xff] %v2364_v30   ;;  %2445 = vst [vmem:[#allocation8 + $0xa0] sm:$0xff] %v2369_v26  }
 0x276   :  { %2446 = vst [vmem:[#allocation8 + $0xa8] sm:$0xff] %v2374_v61   ;;  %2447 = vst [vmem:[#allocation8 + $0xb0] sm:$0xff] %v2379_v6  }
 0x277   :  { %2448 = vst [vmem:[#allocation8 + $0xb8] sm:$0xff] %v2384_v20   ;;  %2449 = vst [vmem:[#allocation8 + $0xc0] sm:$0xff] %v2389_v23  }
 0x278   :  { %2450 = vst [vmem:[#allocation8 + $0xc8] sm:$0xff] %v2394_v42   ;;  %2451 = vst [vmem:[#allocation8 + $0xd0] sm:$0xff] %v2399_v3  }
 0x279   :  { %2452 = vst [vmem:[#allocation8 + $0xd8] sm:$0xff] %v2404_v48   ;;  %2453 = vst [vmem:[#allocation8 + $0xe0] sm:$0xff] %v2409_v38  }
 0x27a   :  { %2454 = vst [vmem:[#allocation8 + $0xe8] sm:$0xff] %v2414_v11   ;;  %2455 = vst [vmem:[#allocation8 + $0xf0] sm:$0xff] %v2419_v51  }
 0x27b   :  { %2666 = shalt.err (!%p2663_p6)
}
 0x27c   :  { %s2667_s22 = scalar_lea.hbm %s3921_s4, 4096 }
 0x27d   :  { %p2668_p7 = scmp.ne.s32.totalorder %s3921_s4, %s2667_s22  ;;  %p2671_p8 = scmp.lt.u32.totalorder %s2667_s22, %s3921_s4 }
 0x27f   :  { %p2673_p9 = pnand %p2671_p8, %p2668_p7 }
 0x281   :  { %2676 = shalt.err (!%p2673_p9)
}
 0x282   :  { %2049 = dma.vmem_to_hbm [thread:$0]  %s2044_s18, 4096, %s3921_s4, [#allocation5], %s2687_s0, %s2687_s0, %s2688_s13  }
 0x283   :  { %2681 = dma.done.wait [#allocation5], 4096  }
 0x284   :  { %2682 = vsyncadd [#allocation5], 4294963200 }
 0x285   :  { %2053 = vsyncpa [#allocation4], 1 }
 0x286   :  { %2054 = vsyncpa [#allocation7], 1 }
 0x287   :  { %2055 = vsyncpa [#allocation5], 1 }

</bundles_post_ra>
